<compile_context>
chip_gen: v6e
topology: v6e:2x2x1
jax: 0.10.0
libtpu: 0.0.40
codegen_flags: <defaults>
</compile_context>

<pallas_src>
import jax
import jax.numpy as jnp
from jax import lax
from jax.experimental import pallas as pl
from jax.experimental.pallas import tpu as pltpu

H = W = 16
HW = H * W            # 256 lanes (2 x 128) -> lane-dense tiles
C_IMG = 3             # original image channels
C_MASK = 8            # `channels` in the torch module
C_MID = 16            # `mid_channels`
EPS = 1e-5            # BatchNorm eps
TAPS = tuple((dy, dx) for dy in (-1, 0, 1) for dx in (-1, 0, 1))


def bem_kernel(im1_ref, mask_ref,
               w1_ref, s1_ref, b1_ref,
               w2_ref, s2_ref, b2_ref,
               w3_ref, s3_ref, b3_ref,
               w4_ref, b4_ref,
               out_ref,
               cat_ref, col_ref):
    f32 = jnp.float32

    def sigmoid(x):
        # exp goes to the EUP; exact reciprocal instead of a VPU divide chain
        return pl.reciprocal(1.0 + jnp.exp(-x))

    # ---- per-tap validity masks (zero padding of the 3x3 convs) ------------
    lane = lax.broadcasted_iota(jnp.int32, (C_MID, HW), 1)
    colm = lane & (W - 1)                  # column index (W is a power of 2)
    up_ok = lane >= W                      # row-1 in bounds  (dy == -1)
    dn_ok = lane < (H - 1) * W             # row+1 in bounds  (dy == +1)
    lf_ok = colm >= 1                      # col-1 in bounds  (dx == -1)
    rt_ok = colm < (W - 1)                 # col+1 in bounds  (dx == +1)

    def tap_mask(dy, dx):
        m = None
        for cond, active in ((up_ok, dy == -1), (dn_ok, dy == 1),
                             (lf_ok, dx == -1), (rt_ok, dx == 1)):
            if active:
                m = cond if m is None else m & cond
        return m

    tap_masks = [tap_mask(dy, dx) for dy, dx in TAPS]

    def shifted(x, k):
        """x (C_MID, HW) spatially shifted by tap k, zero padded at borders."""
        dy, dx = TAPS[k]
        s = dy * W + dx
        y = x if s == 0 else pltpu.roll(x, (-s) % HW, axis=1)
        m = tap_masks[k]
        return y if m is None else jnp.where(m, y, 0.0)

    # ---- image_conv: one (8,27)@(27,256) matmul + folded BN + ReLU ---------
    a1 = jnp.dot(w1_ref[...], im1_ref[0], preferred_element_type=f32)
    orig = jnp.maximum(a1 * s1_ref[...] + b1_ref[...], 0.0)        # (8,256)

    # ---- fine features ------------------------------------------------------
    mask = mask_ref[0]                                             # (8,256)
    fine = orig * sigmoid(mask)

    # concat([mask, fine]) along channels via aligned scratch writes
    cat_ref[pl.ds(0, C_MASK), :] = mask
    cat_ref[pl.ds(C_MASK, C_MASK), :] = fine
    xcat = cat_ref[...]                                            # (16,256)

    # ---- fusion_feats: im2col (144,256), one (16,144)@(144,256) matmul -----
    for k in range(9):
        col_ref[pl.ds(k * C_MID, C_MID), :] = shifted(xcat, k)
    a2 = jnp.dot(w2_ref[...], col_ref[...], preferred_element_type=f32)
    fusion = jnp.maximum(a2 * s2_ref[...] + b2_ref[...], 0.0)      # (16,256)

    # ---- cba: c = sigmoid(X X^T); out = (c^T X) * X -------------------------
    c = lax.dot_general(fusion, fusion, (((1,), (1,)), ((), ())),
                        preferred_element_type=f32)                # (16,16)
    c = sigmoid(c)
    cba = lax.dot_general(c, fusion, (((0,), (0,)), ((), ())),
                          preferred_element_type=f32) * fusion     # (16,256)

    # ---- prediction: 3x3 conv + BN + ReLU, then 1x1 conv (16 -> 1) ---------
    for k in range(9):
        col_ref[pl.ds(k * C_MID, C_MID), :] = shifted(cba, k)
    a3 = jnp.dot(w3_ref[...], col_ref[...], preferred_element_type=f32)
    p = jnp.maximum(a3 * s3_ref[...] + b3_ref[...], 0.0)           # (16,256)

    pred = jnp.dot(w4_ref[...], p, preferred_element_type=f32) + b4_ref[...]
    out_ref[0] = pred                                              # (1,256)


def init_params(key):
    ks = jax.random.split(key, 4)

    def conv_w(k, kh, kw, cin, cout):
        # torch.nn.init.normal_(weight, std=0.01); stored in HWIO layout
        return 0.01 * jax.random.normal(k, (kh, kw, cin, cout), jnp.float32)

    w1 = conv_w(ks[0], 3, 3, C_IMG, C_MASK)
    w2 = conv_w(ks[1], 3, 3, C_MID, C_MID)
    w3 = conv_w(ks[2], 3, 3, C_MID, C_MID)
    w4 = conv_w(ks[3], 1, 1, C_MID, 1)

    def bn_fold(c, conv_bias):
        gamma = jnp.ones((c,), jnp.float32)
        beta = jnp.zeros((c,), jnp.float32)
        mean = jnp.zeros((c,), jnp.float32)
        var = jnp.ones((c,), jnp.float32)
        scale = gamma / jnp.sqrt(var + EPS)
        bias = beta + (conv_bias - mean) * scale
        return scale.reshape(c, 1), bias.reshape(c, 1)

    s1, b1 = bn_fold(C_MASK, jnp.zeros((C_MASK,), jnp.float32))
    s2, b2 = bn_fold(C_MID, jnp.zeros((C_MID,), jnp.float32))
    s3, b3 = bn_fold(C_MID, jnp.zeros((C_MID,), jnp.float32))
    b4 = jnp.zeros((1, 1), jnp.float32)   # conv bias init constant 0

    return dict(w1=w1, s1=s1, b1=b1, w2=w2, s2=s2, b2=b2,
                w3=w3, s3=s3, b3=b3, w4=w4.reshape(C_MID, 1), b4=b4)


def _image_im2col(img_nchw):
    """(B,3,H,W) -> (B, 27, HW): 9 zero-padded taps x 3 channels on sublanes."""
    b = img_nchw.shape[0]
    xp = jnp.pad(img_nchw, ((0, 0), (0, 0), (1, 1), (1, 1)))
    taps = [xp[:, :, dy:dy + H, dx:dx + W]
            for dy in range(3) for dx in range(3)]
    return jnp.stack(taps, axis=1).reshape(b, 9 * C_IMG, HW)


def boundary_enhancement_forward(mask_features, original_images, params):
    B = mask_features.shape[0]
    mask_flat = mask_features.reshape(B, C_MASK, HW)      # free reshape (C,HW)
    im2col1 = _image_im2col(original_images)              # (B, 27, HW)

    # conv weights as (Cout, 9*Cin) matrices matching the im2col row order
    w1m = params["w1"].reshape(9 * C_IMG, C_MASK).T       # (8, 27)
    w2m = params["w2"].reshape(9 * C_MID, C_MID).T        # (16, 144)
    w3m = params["w3"].reshape(9 * C_MID, C_MID).T        # (16, 144)
    w4r = params["w4"].T                                  # (1, 16)

    def const_spec(shape):
        zeros = (0,) * len(shape)
        return pl.BlockSpec(shape, lambda b, _z=zeros: _z)

    def batch_spec(shape):
        return pl.BlockSpec((1,) + shape, lambda b: (b, 0, 0))

    out = pl.pallas_call(
        bem_kernel,
        out_shape=jax.ShapeDtypeStruct((B, 1, HW), jnp.float32),
        grid=(B,),
        in_specs=[
            batch_spec((9 * C_IMG, HW)),
            batch_spec((C_MASK, HW)),
            const_spec((C_MASK, 9 * C_IMG)),
            const_spec((C_MASK, 1)), const_spec((C_MASK, 1)),
            const_spec((C_MID, 9 * C_MID)),
            const_spec((C_MID, 1)), const_spec((C_MID, 1)),
            const_spec((C_MID, 9 * C_MID)),
            const_spec((C_MID, 1)), const_spec((C_MID, 1)),
            const_spec((1, C_MID)), const_spec((1, 1)),
        ],
        out_specs=batch_spec((1, HW)),
        scratch_shapes=[pltpu.VMEM((C_MID, HW), jnp.float32),        # concat
                        pltpu.VMEM((9 * C_MID, HW), jnp.float32)],   # im2col
        compiler_params=pltpu.CompilerParams(
            dimension_semantics=("parallel",)),
    )(im2col1, mask_flat,
      w1m, params["s1"], params["b1"],
      w2m, params["s2"], params["b2"],
      w3m, params["s3"], params["b3"],
      w4r, params["b4"])

    return out.reshape(B, 1, H, W)


def reference_forward(mask_nchw, img_nchw, params):
    """Pure-JAX reference of the torch forward (eval-mode BN)."""
    hp = lax.Precision.HIGHEST

    def conv_bn_relu(x, w, scale, bias):
        y = lax.conv_general_dilated(
            x, w, (1, 1), 'SAME',
            dimension_numbers=('NHWC', 'HWIO', 'NHWC'), precision=hp)
        y = y * scale.reshape(1, 1, 1, -1) + bias.reshape(1, 1, 1, -1)
        return jnp.maximum(y, 0.0)

    mask = mask_nchw.transpose(0, 2, 3, 1)
    img = img_nchw.transpose(0, 2, 3, 1)
    scores = jax.nn.sigmoid(mask)
    orig = conv_bn_relu(img, params["w1"], params["s1"], params["b1"])
    fine = orig * scores
    allf = jnp.concatenate([mask, fine], axis=-1)
    fusion = conv_bn_relu(allf, params["w2"], params["s2"], params["b2"])

    B = fusion.shape[0]
    X = fusion.reshape(B, HW, C_MID)
    c = jax.nn.sigmoid(jnp.einsum('bhc,bhd->bcd', X, X, precision=hp))
    cba = (jnp.einsum('bhc,bcd->bhd', X, c, precision=hp) * X
           ).reshape(B, H, W, C_MID)

    p = conv_bn_relu(cba, params["w3"], params["s3"], params["b3"])
    pred = jnp.einsum('bhwc,co->bhwo', p, params["w4"], precision=hp) \
        + params["b4"].reshape(1, 1, 1, 1)
    return pred.transpose(0, 3, 1, 2)


if __name__ == "__main__":
    key = jax.random.PRNGKey(0)
    k1, k2, k3 = jax.random.split(key, 3)
    mask_features = jax.random.normal(k1, (2, C_MASK, H, W), jnp.float32)
    original_images = jax.random.normal(k2, (2, C_IMG, H, W), jnp.float32)
    params = init_params(k3)

    out = boundary_enhancement_forward(mask_features, original_images, params)
    out = jax.block_until_ready(out)
    assert out.shape == (2, 1, H, W), out.shape

    ref = reference_forward(mask_features, original_images, params)
    if not jnp.allclose(out, ref, atol=1e-4, rtol=1e-4):
        max_err = float(jnp.max(jnp.abs(out - ref)))
        raise AssertionError(f"mismatch vs reference, max abs err = {max_err}")

    print("KERNEL_OK")
</pallas_src>

<mosaic_0001>
module attributes {stable_mosaic.version = 11 : i64} {
  func.func @bem_kernel(%arg0: i32, %arg1: memref<1x27x256xf32, #tpu.memory_space<vmem>>, %arg2: memref<1x8x256xf32, #tpu.memory_space<vmem>>, %arg3: memref<8x27xf32, #tpu.memory_space<vmem>>, %arg4: memref<8x1xf32, #tpu.memory_space<vmem>>, %arg5: memref<8x1xf32, #tpu.memory_space<vmem>>, %arg6: memref<16x144xf32, #tpu.memory_space<vmem>>, %arg7: memref<16x1xf32, #tpu.memory_space<vmem>>, %arg8: memref<16x1xf32, #tpu.memory_space<vmem>>, %arg9: memref<16x144xf32, #tpu.memory_space<vmem>>, %arg10: memref<16x1xf32, #tpu.memory_space<vmem>>, %arg11: memref<16x1xf32, #tpu.memory_space<vmem>>, %arg12: memref<1x16xf32, #tpu.memory_space<vmem>>, %arg13: memref<1x1xf32, #tpu.memory_space<vmem>>, %arg14: memref<1x1x256xf32, #tpu.memory_space<vmem>>, %arg15: memref<16x256xf32, #tpu.memory_space<vmem>>, %arg16: memref<144x256xf32, #tpu.memory_space<vmem>>) attributes {dimension_semantics = [#tpu.dimension_semantics<parallel>], iteration_bounds = array<i64: 2>, scalar_prefetch = 0 : i64, scratch_operands = 2 : i64, tpu.core_type = #tpu.core_type<tc>, window_params = [{transform_indices = @transform_0, window_bounds = array<i64: 1, 27, 256>}, {transform_indices = @transform_1, window_bounds = array<i64: 1, 8, 256>}, {pipeline_mode = #tpu.pipeline_mode<synchronous>, transform_indices = @transform_2, window_bounds = array<i64: 8, 27>}, {pipeline_mode = #tpu.pipeline_mode<synchronous>, transform_indices = @transform_3, window_bounds = array<i64: 8, 1>}, {pipeline_mode = #tpu.pipeline_mode<synchronous>, transform_indices = @transform_4, window_bounds = array<i64: 8, 1>}, {pipeline_mode = #tpu.pipeline_mode<synchronous>, transform_indices = @transform_5, window_bounds = array<i64: 16, 144>}, {pipeline_mode = #tpu.pipeline_mode<synchronous>, transform_indices = @transform_6, window_bounds = array<i64: 16, 1>}, {pipeline_mode = #tpu.pipeline_mode<synchronous>, transform_indices = @transform_7, window_bounds = array<i64: 16, 1>}, {pipeline_mode = #tpu.pipeline_mode<synchronous>, transform_indices = @transform_8, window_bounds = array<i64: 16, 144>}, {pipeline_mode = #tpu.pipeline_mode<synchronous>, transform_indices = @transform_9, window_bounds = array<i64: 16, 1>}, {pipeline_mode = #tpu.pipeline_mode<synchronous>, transform_indices = @transform_10, window_bounds = array<i64: 16, 1>}, {pipeline_mode = #tpu.pipeline_mode<synchronous>, transform_indices = @transform_11, window_bounds = array<i64: 1, 16>}, {pipeline_mode = #tpu.pipeline_mode<synchronous>, transform_indices = @transform_12, window_bounds = array<i64: 1, 1>}, {transform_indices = @transform_13, window_bounds = array<i64: 1, 1, 256>}]} {
    %0 = tpu.iota {dimensions = array<i32: 1>} : vector<16x256xi32>
    %c15_i32 = arith.constant 15 : i32
    %1 = vector.broadcast %c15_i32 : i32 to vector<16x256xi32>
    %2 = arith.andi %0, %1 : vector<16x256xi32>
    %c16_i32 = arith.constant 16 : i32
    %3 = vector.broadcast %c16_i32 : i32 to vector<16x256xi32>
    %4 = arith.cmpi sge, %0, %3 : vector<16x256xi32>
    %c240_i32 = arith.constant 240 : i32
    %5 = vector.broadcast %c240_i32 : i32 to vector<16x256xi32>
    %6 = arith.cmpi slt, %0, %5 : vector<16x256xi32>
    %c1_i32 = arith.constant 1 : i32
    %7 = vector.broadcast %c1_i32 : i32 to vector<16x256xi32>
    %8 = arith.cmpi sge, %2, %7 : vector<16x256xi32>
    %c15_i32_0 = arith.constant 15 : i32
    %9 = vector.broadcast %c15_i32_0 : i32 to vector<16x256xi32>
    %10 = arith.cmpi slt, %2, %9 : vector<16x256xi32>
    %11 = arith.andi %4, %8 : vector<16x256xi1>
    %12 = arith.andi %4, %10 : vector<16x256xi1>
    %13 = arith.andi %6, %8 : vector<16x256xi1>
    %14 = arith.andi %6, %10 : vector<16x256xi1>
    %c0 = arith.constant 0 : index
    %c0_1 = arith.constant 0 : index
    %15 = vector.load %arg3[%c0, %c0_1] : memref<8x27xf32, #tpu.memory_space<vmem>>, vector<8x27xf32>
    %c0_2 = arith.constant 0 : index
    %c0_3 = arith.constant 0 : index
    %c0_4 = arith.constant 0 : index
    %16 = vector.load %arg1[%c0_2, %c0_3, %c0_4] : memref<1x27x256xf32, #tpu.memory_space<vmem>>, vector<1x27x256xf32>
    %17 = vector.shape_cast %16 : vector<1x27x256xf32> to vector<27x256xf32>
    %cst = arith.constant dense<0.000000e+00> : vector<8x256xf32>
    %18 = tpu.matmul %15, %17, %cst {dimension_numbers = #tpu.dot_dimension_numbers<[1], [0], [0], [1], [0, 0, 1, 1], [], []>} : vector<8x27xf32>, vector<27x256xf32>, vector<8x256xf32> -> vector<8x256xf32>
    %c0_5 = arith.constant 0 : index
    %c0_6 = arith.constant 0 : index
    %19 = vector.load %arg4[%c0_5, %c0_6] : memref<8x1xf32, #tpu.memory_space<vmem>>, vector<8x1xf32>
    %20 = vector.broadcast %19 : vector<8x1xf32> to vector<8x256xf32>
    %21 = arith.mulf %18, %20 : vector<8x256xf32>
    %c0_7 = arith.constant 0 : index
    %c0_8 = arith.constant 0 : index
    %22 = vector.load %arg5[%c0_7, %c0_8] : memref<8x1xf32, #tpu.memory_space<vmem>>, vector<8x1xf32>
    %23 = vector.broadcast %22 : vector<8x1xf32> to vector<8x256xf32>
    %24 = arith.addf %21, %23 : vector<8x256xf32>
    %cst_9 = arith.constant 0.000000e+00 : f32
    %25 = vector.broadcast %cst_9 : f32 to vector<8x256xf32>
    %26 = arith.maximumf %24, %25 : vector<8x256xf32>
    %c0_10 = arith.constant 0 : index
    %c0_11 = arith.constant 0 : index
    %c0_12 = arith.constant 0 : index
    %27 = vector.load %arg2[%c0_10, %c0_11, %c0_12] : memref<1x8x256xf32, #tpu.memory_space<vmem>>, vector<1x8x256xf32>
    %28 = vector.shape_cast %27 : vector<1x8x256xf32> to vector<8x256xf32>
    %cst_13 = arith.constant 0.000000e+00 : f32
    %29 = vector.broadcast %cst_13 : f32 to vector<8x256xf32>
    %30 = arith.subf %29, %28 : vector<8x256xf32>
    %31 = math.exp %30 : vector<8x256xf32>
    %cst_14 = arith.constant 1.000000e+00 : f32
    %32 = vector.broadcast %cst_14 : f32 to vector<8x256xf32>
    %33 = arith.addf %32, %31 : vector<8x256xf32>
    %34 = tpu.reciprocal %33 : vector<8x256xf32> -> vector<8x256xf32>
    %35 = arith.mulf %26, %34 : vector<8x256xf32>
    %c0_15 = arith.constant 0 : index
    %c0_16 = arith.constant 0 : index
    %36 = vector.load %arg15[%c0_15, %c0_16] : memref<16x256xf32, #tpu.memory_space<vmem>>, vector<8x256xf32>
    tpu.vector_store %arg15[%c0_15, %c0_16], %28 {strides = array<i32>} : memref<16x256xf32, #tpu.memory_space<vmem>>, vector<8x256xf32>,
    %c8 = arith.constant 8 : index
    %c0_17 = arith.constant 0 : index
    %37 = vector.load %arg15[%c8, %c0_17] : memref<16x256xf32, #tpu.memory_space<vmem>>, vector<8x256xf32>
    tpu.vector_store %arg15[%c8, %c0_17], %35 {strides = array<i32>} : memref<16x256xf32, #tpu.memory_space<vmem>>, vector<8x256xf32>,
    %c0_18 = arith.constant 0 : index
    %c0_19 = arith.constant 0 : index
    %38 = vector.load %arg15[%c0_18, %c0_19] : memref<16x256xf32, #tpu.memory_space<vmem>>, vector<16x256xf32>
    %c17_i32 = arith.constant 17 : i32
    %39 = tpu.dynamic_rotate %38 by %c17_i32 dim 1 : vector<16x256xf32>, i32 -> vector<16x256xf32>
    %cst_20 = arith.constant 0.000000e+00 : f32
    %40 = vector.broadcast %cst_20 : f32 to vector<16x256xf32>
    %41 = arith.select %11, %39, %40 : vector<16x256xi1>, vector<16x256xf32>
    %c0_21 = arith.constant 0 : index
    %c0_22 = arith.constant 0 : index
    %42 = vector.load %arg16[%c0_21, %c0_22] : memref<144x256xf32, #tpu.memory_space<vmem>>, vector<16x256xf32>
    tpu.vector_store %arg16[%c0_21, %c0_22], %41 {strides = array<i32>} : memref<144x256xf32, #tpu.memory_space<vmem>>, vector<16x256xf32>,
    %c16_i32_23 = arith.constant 16 : i32
    %43 = tpu.dynamic_rotate %38 by %c16_i32_23 dim 1 : vector<16x256xf32>, i32 -> vector<16x256xf32>
    %cst_24 = arith.constant 0.000000e+00 : f32
    %44 = vector.broadcast %cst_24 : f32 to vector<16x256xf32>
    %45 = arith.select %4, %43, %44 : vector<16x256xi1>, vector<16x256xf32>
    %c16 = arith.constant 16 : index
    %c0_25 = arith.constant 0 : index
    %46 = vector.load %arg16[%c16, %c0_25] : memref<144x256xf32, #tpu.memory_space<vmem>>, vector<16x256xf32>
    tpu.vector_store %arg16[%c16, %c0_25], %45 {strides = array<i32>} : memref<144x256xf32, #tpu.memory_space<vmem>>, vector<16x256xf32>,
    %c15_i32_26 = arith.constant 15 : i32
    %47 = tpu.dynamic_rotate %38 by %c15_i32_26 dim 1 : vector<16x256xf32>, i32 -> vector<16x256xf32>
    %cst_27 = arith.constant 0.000000e+00 : f32
    %48 = vector.broadcast %cst_27 : f32 to vector<16x256xf32>
    %49 = arith.select %12, %47, %48 : vector<16x256xi1>, vector<16x256xf32>
    %c32 = arith.constant 32 : index
    %c0_28 = arith.constant 0 : index
    %50 = vector.load %arg16[%c32, %c0_28] : memref<144x256xf32, #tpu.memory_space<vmem>>, vector<16x256xf32>
    tpu.vector_store %arg16[%c32, %c0_28], %49 {strides = array<i32>} : memref<144x256xf32, #tpu.memory_space<vmem>>, vector<16x256xf32>,
    %c1_i32_29 = arith.constant 1 : i32
    %51 = tpu.dynamic_rotate %38 by %c1_i32_29 dim 1 : vector<16x256xf32>, i32 -> vector<16x256xf32>
    %cst_30 = arith.constant 0.000000e+00 : f32
    %52 = vector.broadcast %cst_30 : f32 to vector<16x256xf32>
    %53 = arith.select %8, %51, %52 : vector<16x256xi1>, vector<16x256xf32>
    %c48 = arith.constant 48 : index
    %c0_31 = arith.constant 0 : index
    %54 = vector.load %arg16[%c48, %c0_31] : memref<144x256xf32, #tpu.memory_space<vmem>>, vector<16x256xf32>
    tpu.vector_store %arg16[%c48, %c0_31], %53 {strides = array<i32>} : memref<144x256xf32, #tpu.memory_space<vmem>>, vector<16x256xf32>,
    %c64 = arith.constant 64 : index
    %c0_32 = arith.constant 0 : index
    %55 = vector.load %arg16[%c64, %c0_32] : memref<144x256xf32, #tpu.memory_space<vmem>>, vector<16x256xf32>
    tpu.vector_store %arg16[%c64, %c0_32], %38 {strides = array<i32>} : memref<144x256xf32, #tpu.memory_space<vmem>>, vector<16x256xf32>,
    %c255_i32 = arith.constant 255 : i32
    %56 = tpu.dynamic_rotate %38 by %c255_i32 dim 1 : vector<16x256xf32>, i32 -> vector<16x256xf32>
    %cst_33 = arith.constant 0.000000e+00 : f32
    %57 = vector.broadcast %cst_33 : f32 to vector<16x256xf32>
    %58 = arith.select %10, %56, %57 : vector<16x256xi1>, vector<16x256xf32>
    %c80 = arith.constant 80 : index
    %c0_34 = arith.constant 0 : index
    %59 = vector.load %arg16[%c80, %c0_34] : memref<144x256xf32, #tpu.memory_space<vmem>>, vector<16x256xf32>
    tpu.vector_store %arg16[%c80, %c0_34], %58 {strides = array<i32>} : memref<144x256xf32, #tpu.memory_space<vmem>>, vector<16x256xf32>,
    %c241_i32 = arith.constant 241 : i32
    %60 = tpu.dynamic_rotate %38 by %c241_i32 dim 1 : vector<16x256xf32>, i32 -> vector<16x256xf32>
    %cst_35 = arith.constant 0.000000e+00 : f32
    %61 = vector.broadcast %cst_35 : f32 to vector<16x256xf32>
    %62 = arith.select %13, %60, %61 : vector<16x256xi1>, vector<16x256xf32>
    %c96 = arith.constant 96 : index
    %c0_36 = arith.constant 0 : index
    %63 = vector.load %arg16[%c96, %c0_36] : memref<144x256xf32, #tpu.memory_space<vmem>>, vector<16x256xf32>
    tpu.vector_store %arg16[%c96, %c0_36], %62 {strides = array<i32>} : memref<144x256xf32, #tpu.memory_space<vmem>>, vector<16x256xf32>,
    %c240_i32_37 = arith.constant 240 : i32
    %64 = tpu.dynamic_rotate %38 by %c240_i32_37 dim 1 : vector<16x256xf32>, i32 -> vector<16x256xf32>
    %cst_38 = arith.constant 0.000000e+00 : f32
    %65 = vector.broadcast %cst_38 : f32 to vector<16x256xf32>
    %66 = arith.select %6, %64, %65 : vector<16x256xi1>, vector<16x256xf32>
    %c112 = arith.constant 112 : index
    %c0_39 = arith.constant 0 : index
    %67 = vector.load %arg16[%c112, %c0_39] : memref<144x256xf32, #tpu.memory_space<vmem>>, vector<16x256xf32>
    tpu.vector_store %arg16[%c112, %c0_39], %66 {strides = array<i32>} : memref<144x256xf32, #tpu.memory_space<vmem>>, vector<16x256xf32>,
    %c239_i32 = arith.constant 239 : i32
    %68 = tpu.dynamic_rotate %38 by %c239_i32 dim 1 : vector<16x256xf32>, i32 -> vector<16x256xf32>
    %cst_40 = arith.constant 0.000000e+00 : f32
    %69 = vector.broadcast %cst_40 : f32 to vector<16x256xf32>
    %70 = arith.select %14, %68, %69 : vector<16x256xi1>, vector<16x256xf32>
    %c128 = arith.constant 128 : index
    %c0_41 = arith.constant 0 : index
    %71 = vector.load %arg16[%c128, %c0_41] : memref<144x256xf32, #tpu.memory_space<vmem>>, vector<16x256xf32>
    tpu.vector_store %arg16[%c128, %c0_41], %70 {strides = array<i32>} : memref<144x256xf32, #tpu.memory_space<vmem>>, vector<16x256xf32>,
    %c0_42 = arith.constant 0 : index
    %c0_43 = arith.constant 0 : index
    %72 = vector.load %arg6[%c0_42, %c0_43] : memref<16x144xf32, #tpu.memory_space<vmem>>, vector<16x144xf32>
    %c0_44 = arith.constant 0 : index
    %c0_45 = arith.constant 0 : index
    %73 = vector.load %arg16[%c0_44, %c0_45] : memref<144x256xf32, #tpu.memory_space<vmem>>, vector<144x256xf32>
    %cst_46 = arith.constant dense<0.000000e+00> : vector<16x256xf32>
    %74 = tpu.matmul %72, %73, %cst_46 {dimension_numbers = #tpu.dot_dimension_numbers<[1], [0], [0], [1], [0, 0, 1, 1], [], []>} : vector<16x144xf32>, vector<144x256xf32>, vector<16x256xf32> -> vector<16x256xf32>
    %c0_47 = arith.constant 0 : index
    %c0_48 = arith.constant 0 : index
    %75 = vector.load %arg7[%c0_47, %c0_48] : memref<16x1xf32, #tpu.memory_space<vmem>>, vector<16x1xf32>
    %76 = vector.broadcast %75 : vector<16x1xf32> to vector<16x256xf32>
    %77 = arith.mulf %74, %76 : vector<16x256xf32>
    %c0_49 = arith.constant 0 : index
    %c0_50 = arith.constant 0 : index
    %78 = vector.load %arg8[%c0_49, %c0_50] : memref<16x1xf32, #tpu.memory_space<vmem>>, vector<16x1xf32>
    %79 = vector.broadcast %78 : vector<16x1xf32> to vector<16x256xf32>
    %80 = arith.addf %77, %79 : vector<16x256xf32>
    %cst_51 = arith.constant 0.000000e+00 : f32
    %81 = vector.broadcast %cst_51 : f32 to vector<16x256xf32>
    %82 = arith.maximumf %80, %81 : vector<16x256xf32>
    %cst_52 = arith.constant dense<0.000000e+00> : vector<16x16xf32>
    %83 = tpu.matmul %82, %82, %cst_52 {dimension_numbers = #tpu.dot_dimension_numbers<[1], [1], [0], [0], [0, 0, 1, 0], [], []>} : vector<16x256xf32>, vector<16x256xf32>, vector<16x16xf32> -> vector<16x16xf32>
    %cst_53 = arith.constant 0.000000e+00 : f32
    %84 = vector.broadcast %cst_53 : f32 to vector<16x16xf32>
    %85 = arith.subf %84, %83 : vector<16x16xf32>
    %86 = math.exp %85 : vector<16x16xf32>
    %cst_54 = arith.constant 1.000000e+00 : f32
    %87 = vector.broadcast %cst_54 : f32 to vector<16x16xf32>
    %88 = arith.addf %87, %86 : vector<16x16xf32>
    %89 = tpu.reciprocal %88 : vector<16x16xf32> -> vector<16x16xf32>
    %cst_55 = arith.constant dense<0.000000e+00> : vector<16x256xf32>
    %90 = tpu.matmul %89, %82, %cst_55 {dimension_numbers = #tpu.dot_dimension_numbers<[0], [0], [1], [1], [0, 1, 1, 1], [], []>} : vector<16x16xf32>, vector<16x256xf32>, vector<16x256xf32> -> vector<16x256xf32>
    %91 = arith.mulf %90, %82 : vector<16x256xf32>
    %c17_i32_56 = arith.constant 17 : i32
    %92 = tpu.dynamic_rotate %91 by %c17_i32_56 dim 1 : vector<16x256xf32>, i32 -> vector<16x256xf32>
    %cst_57 = arith.constant 0.000000e+00 : f32
    %93 = vector.broadcast %cst_57 : f32 to vector<16x256xf32>
    %94 = arith.select %11, %92, %93 : vector<16x256xi1>, vector<16x256xf32>
    %c0_58 = arith.constant 0 : index
    %c0_59 = arith.constant 0 : index
    %95 = vector.load %arg16[%c0_58, %c0_59] : memref<144x256xf32, #tpu.memory_space<vmem>>, vector<16x256xf32>
    tpu.vector_store %arg16[%c0_58, %c0_59], %94 {strides = array<i32>} : memref<144x256xf32, #tpu.memory_space<vmem>>, vector<16x256xf32>,
    %c16_i32_60 = arith.constant 16 : i32
    %96 = tpu.dynamic_rotate %91 by %c16_i32_60 dim 1 : vector<16x256xf32>, i32 -> vector<16x256xf32>
    %cst_61 = arith.constant 0.000000e+00 : f32
    %97 = vector.broadcast %cst_61 : f32 to vector<16x256xf32>
    %98 = arith.select %4, %96, %97 : vector<16x256xi1>, vector<16x256xf32>
    %c16_62 = arith.constant 16 : index
    %c0_63 = arith.constant 0 : index
    %99 = vector.load %arg16[%c16_62, %c0_63] : memref<144x256xf32, #tpu.memory_space<vmem>>, vector<16x256xf32>
    tpu.vector_store %arg16[%c16_62, %c0_63], %98 {strides = array<i32>} : memref<144x256xf32, #tpu.memory_space<vmem>>, vector<16x256xf32>,
    %c15_i32_64 = arith.constant 15 : i32
    %100 = tpu.dynamic_rotate %91 by %c15_i32_64 dim 1 : vector<16x256xf32>, i32 -> vector<16x256xf32>
    %cst_65 = arith.constant 0.000000e+00 : f32
    %101 = vector.broadcast %cst_65 : f32 to vector<16x256xf32>
    %102 = arith.select %12, %100, %101 : vector<16x256xi1>, vector<16x256xf32>
    %c32_66 = arith.constant 32 : index
    %c0_67 = arith.constant 0 : index
    %103 = vector.load %arg16[%c32_66, %c0_67] : memref<144x256xf32, #tpu.memory_space<vmem>>, vector<16x256xf32>
    tpu.vector_store %arg16[%c32_66, %c0_67], %102 {strides = array<i32>} : memref<144x256xf32, #tpu.memory_space<vmem>>, vector<16x256xf32>,
    %c1_i32_68 = arith.constant 1 : i32
    %104 = tpu.dynamic_rotate %91 by %c1_i32_68 dim 1 : vector<16x256xf32>, i32 -> vector<16x256xf32>
    %cst_69 = arith.constant 0.000000e+00 : f32
    %105 = vector.broadcast %cst_69 : f32 to vector<16x256xf32>
    %106 = arith.select %8, %104, %105 : vector<16x256xi1>, vector<16x256xf32>
    %c48_70 = arith.constant 48 : index
    %c0_71 = arith.constant 0 : index
    %107 = vector.load %arg16[%c48_70, %c0_71] : memref<144x256xf32, #tpu.memory_space<vmem>>, vector<16x256xf32>
    tpu.vector_store %arg16[%c48_70, %c0_71], %106 {strides = array<i32>} : memref<144x256xf32, #tpu.memory_space<vmem>>, vector<16x256xf32>,
    %c64_72 = arith.constant 64 : index
    %c0_73 = arith.constant 0 : index
    %108 = vector.load %arg16[%c64_72, %c0_73] : memref<144x256xf32, #tpu.memory_space<vmem>>, vector<16x256xf32>
    tpu.vector_store %arg16[%c64_72, %c0_73], %91 {strides = array<i32>} : memref<144x256xf32, #tpu.memory_space<vmem>>, vector<16x256xf32>,
    %c255_i32_74 = arith.constant 255 : i32
    %109 = tpu.dynamic_rotate %91 by %c255_i32_74 dim 1 : vector<16x256xf32>, i32 -> vector<16x256xf32>
    %cst_75 = arith.constant 0.000000e+00 : f32
    %110 = vector.broadcast %cst_75 : f32 to vector<16x256xf32>
    %111 = arith.select %10, %109, %110 : vector<16x256xi1>, vector<16x256xf32>
    %c80_76 = arith.constant 80 : index
    %c0_77 = arith.constant 0 : index
    %112 = vector.load %arg16[%c80_76, %c0_77] : memref<144x256xf32, #tpu.memory_space<vmem>>, vector<16x256xf32>
    tpu.vector_store %arg16[%c80_76, %c0_77], %111 {strides = array<i32>} : memref<144x256xf32, #tpu.memory_space<vmem>>, vector<16x256xf32>,
    %c241_i32_78 = arith.constant 241 : i32
    %113 = tpu.dynamic_rotate %91 by %c241_i32_78 dim 1 : vector<16x256xf32>, i32 -> vector<16x256xf32>
    %cst_79 = arith.constant 0.000000e+00 : f32
    %114 = vector.broadcast %cst_79 : f32 to vector<16x256xf32>
    %115 = arith.select %13, %113, %114 : vector<16x256xi1>, vector<16x256xf32>
    %c96_80 = arith.constant 96 : index
    %c0_81 = arith.constant 0 : index
    %116 = vector.load %arg16[%c96_80, %c0_81] : memref<144x256xf32, #tpu.memory_space<vmem>>, vector<16x256xf32>
    tpu.vector_store %arg16[%c96_80, %c0_81], %115 {strides = array<i32>} : memref<144x256xf32, #tpu.memory_space<vmem>>, vector<16x256xf32>,
    %c240_i32_82 = arith.constant 240 : i32
    %117 = tpu.dynamic_rotate %91 by %c240_i32_82 dim 1 : vector<16x256xf32>, i32 -> vector<16x256xf32>
    %cst_83 = arith.constant 0.000000e+00 : f32
    %118 = vector.broadcast %cst_83 : f32 to vector<16x256xf32>
    %119 = arith.select %6, %117, %118 : vector<16x256xi1>, vector<16x256xf32>
    %c112_84 = arith.constant 112 : index
    %c0_85 = arith.constant 0 : index
    %120 = vector.load %arg16[%c112_84, %c0_85] : memref<144x256xf32, #tpu.memory_space<vmem>>, vector<16x256xf32>
    tpu.vector_store %arg16[%c112_84, %c0_85], %119 {strides = array<i32>} : memref<144x256xf32, #tpu.memory_space<vmem>>, vector<16x256xf32>,
    %c239_i32_86 = arith.constant 239 : i32
    %121 = tpu.dynamic_rotate %91 by %c239_i32_86 dim 1 : vector<16x256xf32>, i32 -> vector<16x256xf32>
    %cst_87 = arith.constant 0.000000e+00 : f32
    %122 = vector.broadcast %cst_87 : f32 to vector<16x256xf32>
    %123 = arith.select %14, %121, %122 : vector<16x256xi1>, vector<16x256xf32>
    %c128_88 = arith.constant 128 : index
    %c0_89 = arith.constant 0 : index
    %124 = vector.load %arg16[%c128_88, %c0_89] : memref<144x256xf32, #tpu.memory_space<vmem>>, vector<16x256xf32>
    tpu.vector_store %arg16[%c128_88, %c0_89], %123 {strides = array<i32>} : memref<144x256xf32, #tpu.memory_space<vmem>>, vector<16x256xf32>,
    %c0_90 = arith.constant 0 : index
    %c0_91 = arith.constant 0 : index
    %125 = vector.load %arg9[%c0_90, %c0_91] : memref<16x144xf32, #tpu.memory_space<vmem>>, vector<16x144xf32>
    %c0_92 = arith.constant 0 : index
    %c0_93 = arith.constant 0 : index
    %126 = vector.load %arg16[%c0_92, %c0_93] : memref<144x256xf32, #tpu.memory_space<vmem>>, vector<144x256xf32>
    %cst_94 = arith.constant dense<0.000000e+00> : vector<16x256xf32>
    %127 = tpu.matmul %125, %126, %cst_94 {dimension_numbers = #tpu.dot_dimension_numbers<[1], [0], [0], [1], [0, 0, 1, 1], [], []>} : vector<16x144xf32>, vector<144x256xf32>, vector<16x256xf32> -> vector<16x256xf32>
    %c0_95 = arith.constant 0 : index
    %c0_96 = arith.constant 0 : index
    %128 = vector.load %arg10[%c0_95, %c0_96] : memref<16x1xf32, #tpu.memory_space<vmem>>, vector<16x1xf32>
    %129 = vector.broadcast %128 : vector<16x1xf32> to vector<16x256xf32>
    %130 = arith.mulf %127, %129 : vector<16x256xf32>
    %c0_97 = arith.constant 0 : index
    %c0_98 = arith.constant 0 : index
    %131 = vector.load %arg11[%c0_97, %c0_98] : memref<16x1xf32, #tpu.memory_space<vmem>>, vector<16x1xf32>
    %132 = vector.broadcast %131 : vector<16x1xf32> to vector<16x256xf32>
    %133 = arith.addf %130, %132 : vector<16x256xf32>
    %cst_99 = arith.constant 0.000000e+00 : f32
    %134 = vector.broadcast %cst_99 : f32 to vector<16x256xf32>
    %135 = arith.maximumf %133, %134 : vector<16x256xf32>
    %c0_100 = arith.constant 0 : index
    %c0_101 = arith.constant 0 : index
    %136 = vector.load %arg12[%c0_100, %c0_101] : memref<1x16xf32, #tpu.memory_space<vmem>>, vector<1x16xf32>
    %cst_102 = arith.constant dense<0.000000e+00> : vector<1x256xf32>
    %137 = tpu.matmul %136, %135, %cst_102 {dimension_numbers = #tpu.dot_dimension_numbers<[1], [0], [0], [1], [0, 0, 1, 1], [], []>} : vector<1x16xf32>, vector<16x256xf32>, vector<1x256xf32> -> vector<1x256xf32>
    %c0_103 = arith.constant 0 : index
    %c0_104 = arith.constant 0 : index
    %138 = vector.load %arg13[%c0_103, %c0_104] : memref<1x1xf32, #tpu.memory_space<vmem>>, vector<1x1xf32>
    %139 = vector.broadcast %138 : vector<1x1xf32> to vector<1x256xf32>
    %140 = arith.addf %137, %139 : vector<1x256xf32>
    %c0_105 = arith.constant 0 : index
    %c0_106 = arith.constant 0 : index
    %c0_107 = arith.constant 0 : index
    %141 = vector.load %arg14[%c0_105, %c0_106, %c0_107] : memref<1x1x256xf32, #tpu.memory_space<vmem>>, vector<1x1x256xf32>
    %142 = vector.shape_cast %141 : vector<1x1x256xf32> to vector<1x256xf32>
    %143 = vector.shape_cast %140 : vector<1x256xf32> to vector<1x1x256xf32>
    tpu.vector_store %arg14[%c0_105, %c0_106, %c0_107], %143 {strides = array<i32>} : memref<1x1x256xf32, #tpu.memory_space<vmem>>, vector<1x1x256xf32>,
    return
  }
  func.func @transform_0(%arg0: i32) -> (i32, i32, i32) {
    %c0_i32 = arith.constant 0 : i32
    %c0_i32_0 = arith.constant 0 : i32
    %c0_i32_1 = arith.constant 0 : i32
    return %arg0, %c0_i32, %c0_i32_0 : i32, i32, i32
  }
  func.func @transform_1(%arg0: i32) -> (i32, i32, i32) {
    %c0_i32 = arith.constant 0 : i32
    %c0_i32_0 = arith.constant 0 : i32
    %c0_i32_1 = arith.constant 0 : i32
    return %arg0, %c0_i32, %c0_i32_0 : i32, i32, i32
  }
  func.func @transform_2(%arg0: i32) -> (i32, i32) {
    %c0_i32 = arith.constant 0 : i32
    %c0_i32_0 = arith.constant 0 : i32
    %c0_i32_1 = arith.constant 0 : i32
    return %c0_i32, %c0_i32_0 : i32, i32
  }
  func.func @transform_3(%arg0: i32) -> (i32, i32) {
    %c0_i32 = arith.constant 0 : i32
    %c0_i32_0 = arith.constant 0 : i32
    %c0_i32_1 = arith.constant 0 : i32
    return %c0_i32, %c0_i32_0 : i32, i32
  }
  func.func @transform_4(%arg0: i32) -> (i32, i32) {
    %c0_i32 = arith.constant 0 : i32
    %c0_i32_0 = arith.constant 0 : i32
    %c0_i32_1 = arith.constant 0 : i32
    return %c0_i32, %c0_i32_0 : i32, i32
  }
  func.func @transform_5(%arg0: i32) -> (i32, i32) {
    %c0_i32 = arith.constant 0 : i32
    %c0_i32_0 = arith.constant 0 : i32
    %c0_i32_1 = arith.constant 0 : i32
    return %c0_i32, %c0_i32_0 : i32, i32
  }
  func.func @transform_6(%arg0: i32) -> (i32, i32) {
    %c0_i32 = arith.constant 0 : i32
    %c0_i32_0 = arith.constant 0 : i32
    %c0_i32_1 = arith.constant 0 : i32
    return %c0_i32, %c0_i32_0 : i32, i32
  }
  func.func @transform_7(%arg0: i32) -> (i32, i32) {
    %c0_i32 = arith.constant 0 : i32
    %c0_i32_0 = arith.constant 0 : i32
    %c0_i32_1 = arith.constant 0 : i32
    return %c0_i32, %c0_i32_0 : i32, i32
  }
  func.func @transform_8(%arg0: i32) -> (i32, i32) {
    %c0_i32 = arith.constant 0 : i32
    %c0_i32_0 = arith.constant 0 : i32
    %c0_i32_1 = arith.constant 0 : i32
    return %c0_i32, %c0_i32_0 : i32, i32
  }
  func.func @transform_9(%arg0: i32) -> (i32, i32) {
    %c0_i32 = arith.constant 0 : i32
    %c0_i32_0 = arith.constant 0 : i32
    %c0_i32_1 = arith.constant 0 : i32
    return %c0_i32, %c0_i32_0 : i32, i32
  }
  func.func @transform_10(%arg0: i32) -> (i32, i32) {
    %c0_i32 = arith.constant 0 : i32
    %c0_i32_0 = arith.constant 0 : i32
    %c0_i32_1 = arith.constant 0 : i32
    return %c0_i32, %c0_i32_0 : i32, i32
  }
  func.func @transform_11(%arg0: i32) -> (i32, i32) {
    %c0_i32 = arith.constant 0 : i32
    %c0_i32_0 = arith.constant 0 : i32
    %c0_i32_1 = arith.constant 0 : i32
    return %c0_i32, %c0_i32_0 : i32, i32
  }
  func.func @transform_12(%arg0: i32) -> (i32, i32) {
    %c0_i32 = arith.constant 0 : i32
    %c0_i32_0 = arith.constant 0 : i32
    %c0_i32_1 = arith.constant 0 : i32
    return %c0_i32, %c0_i32_0 : i32, i32
  }
  func.func @transform_13(%arg0: i32) -> (i32, i32, i32) {
    %c0_i32 = arith.constant 0 : i32
    %c0_i32_0 = arith.constant 0 : i32
    %c0_i32_1 = arith.constant 0 : i32
    return %arg0, %c0_i32, %c0_i32_0 : i32, i32, i32
  }
}

</mosaic_0001>

<bundles_post_ra>
// kernel: tpu_custom_call.1
= control target key start
LH: loop header
LB: loop body
LE: loop exit
PB: predicated region body
PF: predicated region fallthrough
CT: control target
= control target key end

     0   :  { %s2615_s0 = inlined_call_operand.vmem [shape: f32[2,27,256], index: 0, kind: input, shape index: {}]   ;;  %s2616_s1 = inlined_call_operand.vmem [shape: f32[2,8,256], index: 1, kind: input, shape index: {}]   ;;  %s2617_s2 = inlined_call_operand.vmem [shape: f32[8,27], index: 2, kind: input, shape index: {}]   ;;  %s2618_s3 = inlined_call_operand.vmem [shape: f32[8,1], index: 3, kind: input, shape index: {}]   ;;  %s2619_s4 = inlined_call_operand.vmem [shape: f32[8,1], index: 4, kind: input, shape index: {}]   ;;  %s2620_s5 = inlined_call_operand.vmem [shape: f32[16,144], index: 5, kind: input, shape index: {}]   ;;  %s2621_s6 = inlined_call_operand.vmem [shape: f32[16,1], index: 6, kind: input, shape index: {}]   ;;  %s2622_s7 = inlined_call_operand.vmem [shape: f32[16,1], index: 7, kind: input, shape index: {}]   ;;  %s2623_s8 = inlined_call_operand.vmem [shape: f32[16,144], index: 8, kind: input, shape index: {}]   ;;  %s2624_s9 = inlined_call_operand.vmem [shape: f32[16,1], index: 9, kind: input, shape index: {}]   ;;  %s2625_s10 = inlined_call_operand.vmem [shape: f32[16,1], index: 10, kind: input, shape index: {}]   ;;  %s2626_s11 = inlined_call_operand.vmem [shape: f32[1,16], index: 11, kind: input, shape index: {}]   ;;  %s2627_s12 = inlined_call_operand.<no memory space> [shape: f32[1,1], index: 12, kind: input, shape index: {}]   ;;  %s2628_s13 = inlined_call_operand.hbm [shape: f32[2,1,256], index: 13, kind: output, shape index: {}]  }
   0x1   :  { %v18_v0 = vstv %s2627_s12 }
   0x2   :  { %19 = vst [vmem:[#allocation4] sm:$0x1] %v18_v0 }
   0x3   :  { %20 = vsyncpa [#allocation6], 0 }
   0x4   :  { %22 = vsyncpa [#allocation6 + $0x1], 0  ;;  %s1964_s27 = smov 0   ;;  %s1966_s28 = smov 0  }
   0x5   :  { %s1968_s29 = smov 0   ;;  %s1970_s30 = smov 0  }
   0x6 LB: > { %2640 = sst [smem:[#allocation8_spill]] %s1873_s29  ;;  %s1985_s12 = sadd.s32 4294967295, %s1877_s30   ;;  %s1877_s30 = sphi %s1970_s30, %s2677_s30   ;;  %s1873_s29 = sphi %s1968_s29, %s2679_s29   ;;  %s1869_s28 = sphi %s1966_s28, %s2681_s28   ;;  %s1865_s27 = sphi %s1964_s27, %s2680_s27  }
   0x7   : > { %s1666_s14 = sadd.s32 4294967294, %s1877_s30   ;;  %s1989_s15 = sadd.s32 1, %s1877_s30  }
   0x8   : > { %2641 = sst [smem:[#allocation9_spill]] %s1989_s15  ;;  %s318_s16 = sadd.s32 1, %s1873_s29 }
   0x9   : > { %s315_s17 = ssub.s32 %s1877_s30, %s1989_s15  ;;  %p328_p0 = scmp.ne.s32.totalorder %s1873_s29, %s1869_s28 }
   0xa   : > { %p316_p1 = scmp.eq.s32.totalorder %s315_s17, 0  ;;  %p329_p2 = scmp.eq.s32.totalorder %s1985_s12, 1 }
   0xb   : > { %p334_p3 = scmp.ne.s32.totalorder %s1869_s28, %s1865_s27  ;;  %p335_p4 = scmp.eq.s32.totalorder %s1666_s14, 1 }
   0xc   : > { %s2000_s18 = scalar_select %p316_p1, %s1873_s29, %s318_s16  }
   0xd   : > { %p2002_p5 = por %p329_p2, %p328_p0  ;;  %p2006_p6 = por %p335_p4, %p334_p3 }
   0xe   : > { %2642 = sst [smem:[#allocation10_spill]] %s2000_s18  ;;  %p1669_p7 = scmp.ge.s32.totalorder %s1877_s30, 1 }
   0xf   : > { %s2644_s20 = scalar_select %p2006_p6, 1, 0 }
  0x10   : > { %p402_p8 = scmp.lt.s32.totalorder %s1877_s30, 3 }
  0x11   : > { %2645 = sst [smem:[#allocation11_spill]] %s2644_s20 }
  0x12   : > { %p403_p9 = pnand %p1669_p7, %p402_p8 }
  0x13   : > { %p451_p10 = scmp.lt.s32.totalorder (!%p403_p9), %s1985_s12, 1  ;;  %s1881_s21 = smov (!%p403_p9), 112  }
  0x14   : > { %406 = sbr.rel (%p403_p9) target bundleno = 1796 (0x704), region = 72  ;;  %s1882_s29 = smov (!%p403_p9), 113  }
  0x15   : > { %s1886_s24 = smov (!%p403_p9), 16   ;;  %s1887_s25 = smov (!%p403_p9), 17  }
  0x16   : > { %s448_s22 = sand.u32 (!%p403_p9), 1, %s1869_s28   ;;  %s1692_s16 = sshll.u32 (!%p403_p9), %s1985_s12, 5 }
  0x19   : > { %v1879_v1 = vmov 0.0   ;;  %v1880_v2 = vmov 0   ;;  %v573_v3 = vld [vmem:[%s2618_s3] sm:$0xff]  ;;  %s452_s23 = scalar_select %p451_p10, %s1985_s12, 1  ;;  %vm495_vm0 = vcmask 1042432   ;;  %vm491_vm1 = vcmask 220160  }
  0x1a   : > { %566 = vmatprep.mubr.f32.mxu0 %v1879_v1  ;;  %1799 = vset.pattern.permute.xlu0 %v1880_v2  ;;  %v581_v4 = vld [vmem:[%s2619_s4] sm:$0xff]  ;;  %v786_v38 = vld [vmem:[%s2620_s5 + $0x8] sm:$0xff]  ;;  %vm825_vm2 = vcmask 130048   ;;  %v461_v53 = vlaneseq }
  0x1b   : > { %576 = vperm.xlu0 %1799, %v573_v3   ;;  %1800 = vset.pattern.permute.xlu1 %v1880_v2  ;;  %s1690_s26 = sshll.u32 %s452_s23, 6  ;;  %s1691_s14 = sshll.u32 %s452_s23, 4  ;;  %v482_v15 = vld [vmem:[%s2617_s2] sm:$0xff]  ;;  %v910_v39 = vld [vmem:[%s2621_s6 + $0x8] sm:$0xff] }
  0x1c   : > { %s455_s18 = scalar_lea.vmem %s2615_s0, %s1690_s26  ;;  %s460_s20 = scalar_lea.vmem %s2616_s1, %s1691_s14  ;;  %1678 = vmatprep.mubr.msk.f32.mxu1 %vm825_vm2, %v786_v38  ;;  %v909_v40 = vld [vmem:[%s2621_s6] sm:$0xff]  ;;  %v926_v41 = vld [vmem:[%s2622_s7 + $0x8] sm:$0xff]  ;;  %v2130_v54 = vand.u32 127, %v461_v53 }
  0x1d   : > { %v490_v5 = vld [vmem:[%s455_s18 + $0x38] sm:$0x7]  ;;  %v2027_v6 = vld [vmem:[%s460_s20 + $0x8] sm:$0xff]  ;;  %v489_v7 = vld [vmem:[%s455_s18 + $0x30] sm:$0x7]  ;;  %s2633_s23 = smov 15  }
  0x1e   : > { %1675 = vmatprep.subr.msk.mxu0 %vm495_vm0, %v490_v5  ;;  %v488_v8 = vld [vmem:[%s455_s18 + $0x28] sm:$0xff]  ;;  %v487_v9 = vld [vmem:[%s455_s18 + $0x20] sm:$0xff]  ;;  %747 = vrot.lane.b32.xlu1 %v2027_v6, %s1881_s21  ;;  %v486_v10 = vld [vmem:[%s455_s18 + $0x18] sm:$0xff]  ;;  %v594_v18 = vsub.f32 0.0, %v2027_v6  ;;  %s1888_s26 = smov 111   ;;  %v2137_v57 = vadd.s32 128, %v2130_v54 }
  0x1f   : > { %584 = vperm.xlu0 %1799, %v581_v4   ;;  %1676 = vmatpush1.msk.msra.mxu0 %vm495_vm0, %v489_v7  ;;  %v2031_v11 = vld [vmem:[%s460_s20] sm:$0xff]  ;;  %v485_v12 = vld [vmem:[%s455_s18 + $0x10] sm:$0xff]  ;;  %v484_v13 = vld [vmem:[%s455_s18 + $0x8] sm:$0xff]  ;;  %s1883_s20 = smov 127   ;;  %vm751_vm4 = vcmp.lt.s32.totalorder %v2130_v54, 112  ;;  %v464_v0 = vand.u32 15, %v2130_v54 }
  0x20   : > { %528 = vmatprep.subr.mxu0 %v488_v8  ;;  %v483_v14 = vld [vmem:[%s455_s18] sm:$0xff]  ;;  %s2635_s18 = smov 1   ;;  %v593_v16 = vsub.f32 0.0, %v2031_v11  ;;  %v597_v19 = vmul.f32 1.442695, %v594_v18  ;;  %v465_v60 = vand.u32 15, %v2137_v57 }
  0x21   : > { %529 = vmatpush1.msra.mxu0 %v487_v9  ;;  %v925_v42 = vld [vmem:[%s2622_s7] sm:$0xff]  ;;  %vm469_vm3 = vcmp.lt.s32.totalorder %v2137_v57, 240  ;;  %vm730_vm7 = vcmp.lt.s32.totalorder %v2130_v54, 113  ;;  %vm2170_vm8 = vcmp.ge.s32.totalorder %v464_v0, 1  ;;  %vm709_vm10 = vcmp.lt.s32.totalorder %v2130_v54, 127  ;;  %s1670_s14 = sshll.u32 %s448_s22, 1 }
  0x22   : > { %530 = vmatprep.subr.mxu0 %v486_v10  ;;  %726 = vrot.lane.b32.xlu1 %v2027_v6, %s1882_s29  ;;  %v595_v17 = vmul.f32 1.442695, %v593_v16  ;;  %vm2142_vm5 = vcmp.ge.s32.totalorder %v465_v60, 1  ;;  %vm2182_vm9 = vcmp.lt.s32.totalorder %v465_v60, 15  ;;  %vm2193_vm11 = vcmp.lt.s32.totalorder %v464_v0, 15  ;;  %v785_v60 = vld [vmem:[%s2620_s5] sm:$0xff] }
  0x23   : > { %743 = vrot.lane.b32.xlu0 %v2031_v11, %s1881_s21  ;;  %531 = vmatpush1.msra.mxu0 %v485_v12  ;;  %vm2159_vm6 = vmand %vm469_vm3, %vm2142_vm5  ;;  %vm2639_vm12 = vcmp.lt.s32.totalorder %v2130_v54, 1  ;;  %vm466_vm13 = vcmp.ge.s32.totalorder %v2130_v54, 16  ;;  %vm2637_vm14 = vcmp.lt.s32.totalorder %v2130_v54, 15  ;;  %vm2638_vm0 = vcmp.lt.s32.totalorder %v2130_v54, 16 }
  0x24   : > { %532 = vmatprep.subr.mxu0 %v484_v13  ;;  %1801 = vpow2.f32 %v595_v17  ;;  %vm2244_vm15 = vmand %vm466_vm13, %vm2193_vm11 }
  0x25   : > { %533 = vmatpush1.msra.mxu0 %v483_v14  ;;  %1803 = vpow2.f32 %v597_v19 }
  0x26   : > { %1677 = vmatmul.mubr.msk.f32.vlgmr.msra.gmra.mxu0 %vm491_vm1, %v482_v15  ;;  %705 = vrot.lane.b32.xlu1 %v2027_v6, %s1883_s20  ;;  %vm621_vm1 = vcmp.lt.s32.totalorder %v2130_v54, 17 }
  0x27   : > { %722 = vrot.lane.b32.xlu0 %v2031_v11, %s1882_s29  ;;  %1132 = vmatprep.mubr.f32.mxu0 %v1879_v1 }
  0x2a   : > { %680 = vrot.lane.b32.xlu1 %v2027_v6, %s2635_s18 }
  0x2b   : > { %701 = vrot.lane.b32.xlu0 %v2031_v11, %s1883_s20 }
  0x2e   : > { %659 = vrot.lane.b32.xlu1 %v2027_v6, %s2633_s23 }
  0x2f   : > { %676 = vrot.lane.b32.xlu0 %v2031_v11, %s2635_s18 }
  0x31   : > { %v1802_v20 = vpop.eup %1801 }
  0x32   : > { %638 = vrot.lane.b32.xlu1 %v2027_v6, %s1886_s24  ;;  %v599_v21 = vadd.f32 1.0, %v1802_v20  ;;  %v1804_v22 = vpop.eup %1803 }
  0x33   : > { %655 = vrot.lane.b32.xlu0 %v2031_v11, %s2633_s23  ;;  %v600_v23 = vadd.f32 1.0, %v1804_v22 }
  0x34   : > { %1805 = vrcp.f32 %v599_v21 }
  0x35   : > { %1807 = vrcp.f32 %v600_v23 }
  0x37   : > { %634 = vrot.lane.b32.xlu0 %v2031_v11, %s1886_s24 }
  0x41   : > { %v1806_v31 = vpop.eup %1805 }
  0x42   : > { %v1808_v36 = vpop.eup %1807 }
  0x90   : > { %v748_v43 = vpop.permute.xlu1 %747 }
  0x94   : > { %v727_v45 = vpop.permute.xlu1 %726 }
  0x96   : > { %v577_v24 = vpop.permute.xlu0 %576 }
  0x98   : > { %v706_v47 = vpop.permute.xlu1 %705 }
  0x9a   : > { %v585_v27 = vpop.permute.xlu0 %584 }
  0x9c   : > { %v2121_v49 = vpop.permute.xlu1 %680 }
  0x9e   : > { %v744_v44 = vpop.permute.xlu0 %743 }
  0x9f   : > { %v754_v4 = vsel %vm751_vm4, %v748_v43, %v744_v44  ;;  %v752_v9 = vsel %vm751_vm4, %v744_v44, %v748_v43  ;;  %v1316_v43 = vld [vmem:[%s2623_s8 + $0x18] sm:$0xff] }
  0xa0   : > { %v2125_v51 = vpop.permute.xlu1 %659 }
  0xa2   : > { %v723_v46 = vpop.permute.xlu0 %722 }
  0xa3   : > { %v733_v14 = vsel %vm730_vm7, %v727_v45, %v723_v46  ;;  %v731_v16 = vsel %vm730_vm7, %v723_v46, %v727_v45 }
  0xa4   : > { %v2132_v55 = vpop.permute.xlu1 %638 }
  0xa6   : > { %v702_v48 = vpop.permute.xlu0 %701 }
  0xa7   : > { %v712_v22 = vsel %vm709_vm10, %v706_v47, %v702_v48  ;;  %v710_v23 = vsel %vm709_vm10, %v702_v48, %v706_v47 }
  0xaa   : > { %v2123_v50 = vpop.permute.xlu0 %676 }
  0xae   : > { %v2127_v52 = vpop.permute.xlu0 %655 }
  0xb2   : > { %v2134_v56 = vpop.permute.xlu0 %634 }
  0xe6   : > { %v568_v25 = vpop.f32.mrf.mxu0 }
  0xe7   : > { %v579_v26 = vmul.f32 %v577_v24, %v568_v25 }
  0xe8   : > { %v570_v28 = vpop.f32.mrf.mxu0 }
  0xe9   : > { %v587_v29 = vadd.f32 %v585_v27, %v579_v26  ;;  %v580_v30 = vmul.f32 %v577_v24, %v570_v28 }
  0xeb   : > { %v589_v32 = vmax.f32 %v587_v29, 0.0  ;;  %v588_v33 = vadd.f32 %v585_v27, %v580_v30  ;;  %v687_v30 = vsel %vm2639_vm12, %v2121_v49, %v2123_v50 }
  0xed   : > { %v2061_v34 = vmul.f32 %v1806_v31, %v589_v32  ;;  %v590_v35 = vmax.f32 %v588_v33, 0.0 }
  0xef   : > { %724 = vrot.lane.b32.xlu0 %v2061_v34, %s1882_s29  ;;  %745 = vrot.lane.b32.xlu1 %v2061_v34, %s1881_s21  ;;  %v2067_v37 = vmul.f32 %v1808_v36, %v590_v35  ;;  %v666_v35 = vsel %vm2637_vm14, %v2125_v51, %v2127_v52 }
  0xf3   : > { %703 = vrot.lane.b32.xlu0 %v2061_v34, %s1883_s20  ;;  %749 = vrot.lane.b32.xlu1 %v2067_v37, %s1881_s21 }
  0xf7   : > { %613 = vrot.lane.b32.xlu0 %v2031_v11, %s1887_s25  ;;  %728 = vrot.lane.b32.xlu1 %v2067_v37, %s1882_s29 }
  0xfb   : > { %678 = vrot.lane.b32.xlu0 %v2061_v34, %s2635_s18  ;;  %707 = vrot.lane.b32.xlu1 %v2067_v37, %s1883_s20 }
  0xff   : > { %657 = vrot.lane.b32.xlu0 %v2061_v34, %s2633_s23  ;;  %617 = vrot.lane.b32.xlu1 %v2027_v6, %s1887_s25 }
 0x103   : > { %636 = vrot.lane.b32.xlu0 %v2061_v34, %s1886_s24  ;;  %682 = vrot.lane.b32.xlu1 %v2067_v37, %s2635_s18  ;;  %s1593_s18 = scalar_lea.hbm %s2628_s13, %s1692_s16 }
 0x107   : > { %615 = vrot.lane.b32.xlu0 %v2061_v34, %s1887_s25  ;;  %661 = vrot.lane.b32.xlu1 %v2067_v37, %s2633_s23  ;;  %s1581_s23 = scalar_lea.sflag [#allocation6], %s448_s22 }
 0x10b   : > { %766 = vrot.lane.b32.xlu0 %v2061_v34, %s1888_s26  ;;  %640 = vrot.lane.b32.xlu1 %v2067_v37, %s1886_s24 }
 0x10f   : > { %764 = vrot.lane.b32.xlu0 %v2031_v11, %s1888_s26  ;;  %619 = vrot.lane.b32.xlu1 %v2067_v37, %s1887_s25 }
 0x113   : > { %918 = vperm.xlu0 %1799, %v910_v39   ;;  %770 = vrot.lane.b32.xlu1 %v2067_v37, %s1888_s26 }
 0x117   : > { %913 = vperm.xlu0 %1799, %v909_v40   ;;  %768 = vrot.lane.b32.xlu1 %v2027_v6, %s1888_s26  ;;  %v643_v40 = vsel %vm2638_vm0, %v2134_v56, %v2132_v55 }
 0x11b   : > { %934 = vperm.xlu1 %1800, %v926_v41   ;;  %v645_v41 = vsel %vm2638_vm0, %v2132_v55, %v2134_v56 }
 0x11f   : > { %929 = vperm.xlu1 %1800, %v925_v42  }
 0x161   : > { %v725_v58 = vpop.permute.xlu0 %724  ;;  %v746_v59 = vpop.permute.xlu1 %745 }
 0x165   : > { %v704_v61 = vpop.permute.xlu0 %703  ;;  %v750_v62 = vpop.permute.xlu1 %749 }
 0x166   : > { %v755_v2 = vsel %vm751_vm4, %v750_v62, %v746_v59  ;;  %v753_v3 = vsel %vm751_vm4, %v746_v59, %v750_v62  ;;  %v787_v62 = vld [vmem:[%s2620_s5 + $0x10] sm:$0xff] }
 0x167   : > { %1693 = vmatprep.subr.msk.mxu1 %vm469_vm3, %v755_v2 }
 0x168   : > { %833 = vmatpush1.msra.mxu1 %v753_v3 }
 0x169   : > { %v2164_v7 = vpop.permute.xlu0 %613  ;;  %1694 = vmatprep.subr.msk.mxu1 %vm469_vm3, %v754_v4  ;;  %v729_v8 = vpop.permute.xlu1 %728 }
 0x16a   : > { %v732_v12 = vsel %vm730_vm7, %v725_v58, %v729_v8  ;;  %v734_v13 = vsel %vm730_vm7, %v729_v8, %v725_v58  ;;  %835 = vmatpush1.msra.mxu1 %v752_v9 }
 0x16b   : > { %1695 = vmatprep.subr.msk.mxu1 %vm2159_vm6, %v734_v13 }
 0x16c   : > { %1696 = vmatpush1.msk.msra.mxu1 %vm2170_vm8, %v732_v12 }
 0x16d   : > { %v679_v17 = vpop.permute.xlu0 %678  ;;  %1697 = vmatprep.subr.msk.mxu1 %vm2159_vm6, %v733_v14  ;;  %v708_v18 = vpop.permute.xlu1 %707 }
 0x16e   : > { %v711_v20 = vsel %vm709_vm10, %v704_v61, %v708_v18  ;;  %v713_v21 = vsel %vm709_vm10, %v708_v18, %v704_v61  ;;  %1698 = vmatpush1.msk.msra.mxu1 %vm2170_vm8, %v731_v16  ;;  %v788_v61 = vld [vmem:[%s2620_s5 + $0x18] sm:$0xff] }
 0x16f   : > { %1699 = vmatprep.subr.msk.mxu1 %vm2182_vm9, %v713_v21 }
 0x170   : > { %1700 = vmatpush1.msk.msra.mxu1 %vm2193_vm11, %v711_v20 }
 0x171   : > { %v658_v24 = vpop.permute.xlu0 %657  ;;  %1701 = vmatprep.subr.msk.mxu1 %vm2182_vm9, %v712_v22  ;;  %v618_v25 = vpop.permute.xlu1 %617 }
 0x172   : > { %1702 = vmatpush1.msk.msra.mxu1 %vm2193_vm11, %v710_v23  ;;  %v622_v47 = vsel %vm621_vm1, %v2164_v7, %v618_v25 }
 0x173   : > { %844 = vmatprep.subr.mxu1 %v2067_v37 }
 0x174   : > { %845 = vmatpush1.msra.mxu1 %v2061_v34  ;;  %v664_v34 = vsel %vm2637_vm14, %v2127_v52, %v2125_v51 }
 0x175   : > { %846 = vmatprep.subr.mxu1 %v2027_v6  ;;  %v683_v26 = vpop.permute.xlu1 %682  ;;  %v637_v29 = vpop.permute.xlu0 %636  ;;  %v685_v6 = vsel %vm2639_vm12, %v2123_v50, %v2121_v49  ;;  %v624_v49 = vsel %vm621_vm1, %v618_v25, %v2164_v7 }
 0x176   : > { %v686_v27 = vsel %vm2639_vm12, %v679_v17, %v683_v26  ;;  %v688_v28 = vsel %vm2639_vm12, %v683_v26, %v679_v17  ;;  %847 = vmatpush1.msra.mxu1 %v2031_v11  ;;  %vm2312_vm12 = vmand %vm469_vm3, %vm2182_vm9 }
 0x177   : > { %1703 = vmatprep.subr.msk.mxu1 %vm2142_vm5, %v686_v27 }
 0x178   : > { %1704 = vmatpush1.msk.msra.mxu1 %vm2170_vm8, %v688_v28 }
 0x179   : > { %1705 = vmatprep.subr.msk.mxu1 %vm2142_vm5, %v685_v6  ;;  %v662_v11 = vpop.permute.xlu1 %661  ;;  %v616_v36 = vpop.permute.xlu0 %615 }
 0x17a   : > { %v665_v32 = vsel %vm2637_vm14, %v658_v24, %v662_v11  ;;  %v667_v33 = vsel %vm2637_vm14, %v662_v11, %v658_v24  ;;  %1706 = vmatpush1.msk.msra.mxu1 %vm2170_vm8, %v687_v30  ;;  %vm2290_vm14 = vmand %vm466_vm13, %vm2170_vm8 }
 0x17b   : > { %1707 = vmatprep.subr.msk.mxu1 %vm2182_vm9, %v665_v32 }
 0x17c   : > { %1708 = vmatpush1.msk.msra.mxu1 %vm2244_vm15, %v667_v33 }
 0x17d   : > { %1709 = vmatprep.subr.msk.mxu1 %vm2182_vm9, %v664_v34  ;;  %v641_v37 = vpop.permute.xlu1 %640  ;;  %v767_v46 = vpop.permute.xlu0 %766 }
 0x17e   : > { %v646_v38 = vsel %vm2638_vm0, %v641_v37, %v637_v29  ;;  %1710 = vmatpush1.msk.msra.mxu1 %vm2244_vm15, %v666_v35  ;;  %v644_v39 = vsel %vm2638_vm0, %v637_v29, %v641_v37  ;;  %vm772_vm0 = vcmp.lt.s32.totalorder %v2130_v54, 111 }
 0x17f   : > { %856 = vmatprep.subr.mxu1 %v644_v39 }
 0x180   : > { %1711 = vmatpush1.msk.msra.mxu1 %vm466_vm13, %v646_v38 }
 0x181   : > { %858 = vmatprep.subr.mxu1 %v643_v40  ;;  %v620_v42 = vpop.permute.xlu1 %619  ;;  %v765_v55 = vpop.permute.xlu0 %764 }
 0x182   : > { %v623_v44 = vsel %vm621_vm1, %v616_v36, %v620_v42  ;;  %v625_v45 = vsel %vm621_vm1, %v620_v42, %v616_v36  ;;  %1712 = vmatpush1.msk.msra.mxu1 %vm466_vm13, %v645_v41 }
 0x183   : > { %1713 = vmatprep.subr.msk.mxu1 %vm2142_vm5, %v623_v44 }
 0x184   : > { %1714 = vmatpush1.msk.msra.mxu1 %vm2290_vm14, %v625_v45 }
 0x185   : > { %1715 = vmatprep.subr.msk.mxu1 %vm2142_vm5, %v622_v47  ;;  %v771_v50 = vpop.permute.xlu1 %770 }
 0x186   : > { %v774_v51 = vsel %vm772_vm0, %v767_v46, %v771_v50  ;;  %v776_v52 = vsel %vm772_vm0, %v771_v50, %v767_v46  ;;  %1716 = vmatpush1.msk.msra.mxu1 %vm2290_vm14, %v624_v49 }
 0x187   : > { %1717 = vmatprep.subr.msk.mxu1 %vm2312_vm12, %v776_v52  ;;  %v1453_v52 = vld [vmem:[%s2625_s10 + $0x8] sm:$0xff] }
 0x188   : > { %1718 = vmatpush2.msk.msra.mxu1 %vm2193_vm11, %v774_v51  ;;  %v1437_v51 = vld [vmem:[%s2624_s9 + $0x8] sm:$0xff] }
 0x189   : > { %v769_v56 = vpop.permute.xlu1 %768 }
 0x18a   : > { %v773_v58 = vsel %vm772_vm0, %v765_v55, %v769_v56  ;;  %v775_v59 = vsel %vm772_vm0, %v769_v56, %v765_v55  ;;  %v1473_v55 = vld [vmem:[#allocation4] sm:$0x1]  ;;  %v1314_v56 = vld [vmem:[%s2623_s8 + $0x8] sm:$0xff] }
 0x18b   : > { %1719 = vmatprep.subr.msk.mxu1 %vm2312_vm12, %v775_v59  ;;  %v1452_v59 = vld [vmem:[%s2625_s10] sm:$0xff] }
 0x18c   : > { %1720 = vmatpush2.msk.msra.mxu1 %vm2193_vm11, %v773_v58  ;;  %v1436_v58 = vld [vmem:[%s2624_s9] sm:$0xff] }
 0x18d   : > { %897 = vmatmul.mubr.f32.vlgmr.msra.gmra.mxu1 %v785_v60 }
 0x18e   : > { %1679 = vmatprep.mubr.msk.f32.mxu1 %vm825_vm2, %v788_v61  ;;  %v919_v0 = vpop.permute.xlu0 %918 }
 0x191   : > { %903 = vmatmul.mubr.f32.gmra.mxu1 %v787_v62 }
 0x192   : > { %v914_v4 = vpop.permute.xlu0 %913 }
 0x196   : > { %v935_v2 = vpop.permute.xlu1 %934 }
 0x19a   : > { %v930_v9 = vpop.permute.xlu1 %929 }
 0x24d   : > { %v898_v3 = vpop.f32.mrf.mxu1 }
 0x24e   : > { %v921_v16 = vmul.f32 %v914_v4, %v898_v3 }
 0x24f   : > { %v900_v7 = vpop.f32.mrf.mxu1 }
 0x250   : > { %v922_v8 = vmul.f32 %v914_v4, %v900_v7  ;;  %v937_v23 = vadd.f32 %v930_v9, %v921_v16 }
 0x251   : > { %v904_v12 = vpop.f32.mrf.mxu1 }
 0x252   : > { %v938_v13 = vadd.f32 %v930_v9, %v922_v8  ;;  %v923_v14 = vmul.f32 %v919_v0, %v904_v12  ;;  %v941_v26 = vmax.f32 %v937_v23, 0.0 }
 0x253   : > { %v906_v17 = vpop.f32.mrf.mxu1 }
 0x254   : > { %v942_v18 = vmax.f32 %v938_v13, 0.0  ;;  %v924_v20 = vmul.f32 %v919_v0, %v906_v17  ;;  %v939_v21 = vadd.f32 %v935_v2, %v923_v14 }
 0x256   : > { %v940_v22 = vadd.f32 %v935_v2, %v924_v20  ;;  %1009 = vmatprep.mubr.f32.mxu1 %v942_v18  ;;  %v943_v25 = vmax.f32 %v939_v21, 0.0 }
 0x258   : > { %v944_v24 = vmax.f32 %v940_v22, 0.0 }
 0x25a   : > { %973 = vmatprep.subr.mxu1 %v944_v24  ;;  %1096 = vmatprep.subr.mxu0 %v944_v24 }
 0x25b   : > { %974 = vmatpush1.xpose.msra.mxu1 %v943_v25  ;;  %1097 = vmatpush1.msra.mxu0 %v943_v25 }
 0x25c   : > { %975 = vmatprep.subr.mxu1 %v942_v18  ;;  %1098 = vmatprep.subr.mxu0 %v942_v18 }
 0x25d   : > { %1099 = vmatpush1.msra.mxu0 %v941_v26 }
 0x25f   : > { %976 = vmatpush1.xpose.msra.mxu1 %v941_v26 }
 0x262   : > { %1010 = vmatmul.mubr.f32.vlgmr.msra.gmra.mxu1 %v941_v26 }
 0x263   : > { %1014 = vmatprep.mubr.f32.mxu1 %v944_v24 }
 0x266   : > { %1015 = vmatmul.mubr.f32.gmra.mxu1 %v943_v25 }
 0x267   : > { %1550 = vmatprep.mubr.f32.mxu1 %v1879_v1 }
 0x322   : > { %v1011_v27 = vpop.f32.mrf.mxu1 }
 0x323   : > { %v1020_v28 = vsub.f32 0.0, %v1011_v27 }
 0x324   : > { %v1013_v29 = vpop.f32.mrf.mxu1 }
 0x325   : > { %v1022_v6 = vmul.f32 1.442695, %v1020_v28 }
 0x326   : > { %v1016_v30 = vpop.f32.mrf.mxu1 }
 0x327   : > { %1809 = vpow2.f32 %v1022_v6  ;;  %v1021_v11 = vsub.f32 0.0, %v1016_v30 }
 0x328   : > { %v1018_v32 = vpop.f32.mrf.mxu1 }
 0x329   : > { %v1024_v33 = vmul.f32 1.442695, %v1021_v11 }
 0x32b   : > { %1811 = vpow2.f32 %v1024_v33 }
 0x334   : > { %v1810_v34 = vpop.eup %1809 }
 0x335   : > { %v1026_v35 = vadd.f32 1.0, %v1810_v34 }
 0x337   : > { %1813 = vrcp.f32 %v1026_v35 }
 0x338   : > { %v1812_v36 = vpop.eup %1811 }
 0x339   : > { %v1027_v37 = vadd.f32 1.0, %v1812_v36 }
 0x33b   : > { %1815 = vrcp.f32 %v1027_v37 }
 0x344   : > { %v1814_v38 = vpop.eup %1813 }
 0x345   : > { %1030 = vxpose.xlu0.b32.start [1/2] (short) (narrow) %v1814_v38, 16 }
 0x348   : > { %v1816_v39 = vpop.eup %1815 }
 0x349   : > { %1031 = vxpose.xlu0.b32.end [2/2] (short) (narrow) %v1816_v39, 16 }
 0x3c1   : > { %v1046_v40 = vpop.trf.xlu0 }
 0x3c2   : > { %1680 = vmatmul.mubr.msk.f32.vlgmr.msra.gmra.mxu0 %vm825_vm2, %v1046_v40 }
 0x3c3   : > { %1138 = vmatprep.mubr.f32.mxu0 %v1879_v1 }
 0x3c5   : > { %v1047_v41 = vpop.trf.xlu0 }
 0x3c6   : > { %1681 = vmatmul.mubr.msk.f32.gmra.mxu0 %vm825_vm2, %v1047_v41 }
 0x3c7   : > { %1682 = vmatprep.mubr.msk.f32.mxu0 %vm825_vm2, %v1314_v56 }
 0x482   : > { %v1134_v42 = vpop.f32.mrf.mxu0 }
 0x483   : > { %v2353_v44 = vmul.f32 %v1134_v42, %v941_v26 }
 0x484   : > { %v1136_v45 = vpop.f32.mrf.mxu0 }
 0x485   : > { %1273 = vrot.lane.b32.xlu1 %v2353_v44, %s1881_s21  ;;  %v2361_v50 = vmul.f32 %v1136_v45, %v942_v18 }
 0x486   : > { %v1140_v46 = vpop.f32.mrf.mxu0 }
 0x487   : > { %v2365_v1 = vmul.f32 %v1140_v46, %v943_v25 }
 0x488   : > { %v1142_v47 = vpop.f32.mrf.mxu0 }
 0x489   : > { %v2357_v49 = vmul.f32 %v1142_v47, %v944_v24  ;;  %1253 = vrot.lane.b32.xlu1 %v2353_v44, %s1882_s29 }
 0x48b   : > { %1239 = vrot.lane.b32.xlu0 %v2357_v49, %s1883_s20 }
 0x48d   : > { %1277 = vrot.lane.b32.xlu1 %v2361_v50, %s1881_s21 }
 0x48f   : > { %1171 = vrot.lane.b32.xlu0 %v2365_v1, %s1886_s24 }
 0x491   : > { %1257 = vrot.lane.b32.xlu1 %v2361_v50, %s1882_s29 }
 0x493   : > { %1169 = vrot.lane.b32.xlu0 %v2353_v44, %s1886_s24 }
 0x495   : > { %1275 = vrot.lane.b32.xlu1 %v2365_v1, %s1881_s21 }
 0x497   : > { %1151 = vrot.lane.b32.xlu0 %v2365_v1, %s1887_s25 }
 0x499   : > { %1255 = vrot.lane.b32.xlu1 %v2365_v1, %s1882_s29 }
 0x49b   : > { %1149 = vrot.lane.b32.xlu0 %v2353_v44, %s1887_s25 }
 0x49d   : > { %1235 = vrot.lane.b32.xlu1 %v2365_v1, %s1883_s20 }
 0x49f   : > { %1295 = vrot.lane.b32.xlu0 %v2365_v1, %s1888_s26 }
 0x4a1   : > { %1279 = vrot.lane.b32.xlu1 %v2357_v49, %s1881_s21  ;;  %s2662_s21 = smov 1  }
 0x4a3   : > { %1293 = vrot.lane.b32.xlu0 %v2353_v44, %s1888_s26 }
 0x4a5   : > { %1259 = vrot.lane.b32.xlu1 %v2357_v49, %s1882_s29  ;;  %s2663_s29 = smov 15  }
 0x4a7   : > { %1445 = vperm.xlu0 %1799, %v1437_v51  }
 0x4a9   : > { %1233 = vrot.lane.b32.xlu1 %v2353_v44, %s1883_s20 }
 0x4ab   : > { %1461 = vperm.xlu0 %1799, %v1453_v52  }
 0x4ad   : > { %1237 = vrot.lane.b32.xlu1 %v2361_v50, %s1883_s20 }
 0x4af   : > { %1476 = vperm.xlu0 %1799, %v1473_v55  }
 0x4b1   : > { %1211 = vrot.lane.b32.xlu1 %v2365_v1, %s2662_s21 }
 0x4b5   : > { %1209 = vrot.lane.b32.xlu1 %v2353_v44, %s2662_s21 }
 0x4b9   : > { %1213 = vrot.lane.b32.xlu1 %v2361_v50, %s2662_s21 }
 0x4bd   : > { %1191 = vrot.lane.b32.xlu1 %v2365_v1, %s2663_s29 }
 0x4c1   : > { %1189 = vrot.lane.b32.xlu1 %v2353_v44, %s2663_s29 }
 0x4c5   : > { %1193 = vrot.lane.b32.xlu1 %v2361_v50, %s2663_s29 }
 0x4c9   : > { %1173 = vrot.lane.b32.xlu1 %v2361_v50, %s1886_s24 }
 0x4cd   : > { %1153 = vrot.lane.b32.xlu1 %v2361_v50, %s1887_s25 }
 0x4d1   : > { %1215 = vrot.lane.b32.xlu1 %v2357_v49, %s2662_s21  ;;  %s1890_s21 = smov [#allocation5]  }
 0x4d2   : > { %s1821_s12 = sshll.u32 %s1890_s21, 4  ;;  %s1822_s12 = int_to_ptr.vmem [resolvable:$false] %s1821_s12 }
 0x4d5   : > { %1195 = vrot.lane.b32.xlu1 %v2357_v49, %s2663_s29  ;;  %s1823_s29 = scalar_lea.vmem %s1822_s12, 64 }
 0x4d9   : > { %1175 = vrot.lane.b32.xlu1 %v2357_v49, %s1886_s24  ;;  %s450_s24 = scalar_lea.vmem [#allocation5], %s1670_s14 }
 0x4da   : > { %s1595_s17 = sshll.u32 %s450_s24, 4  ;;  %s1596_s17 = int_to_ptr.vmem [resolvable:$true] %s1595_s17 }
 0x4db   : > { %s1817_s15 = scalar_lea.vmem %s1596_s17, 32  ;;  %p1824_p0 = scmp.lt.s32.totalorder %s1596_s17, %s1822_s12 }
 0x4dc   : > { %p1818_p11 = scmp.ne.s32.totalorder %s1596_s17, %s1817_s15  ;;  %p1825_p1 = scmp.lt.s32.totalorder %s1823_s29, %s1817_s15 }
 0x4dd   : > { %1155 = vrot.lane.b32.xlu1 %v2357_v49, %s1887_s25 }
 0x4de   : > { %p1819_p12 = pnand %p1818_p11, %p2002_p5  ;;  %p1826_p2 = por %p1825_p1, %p1824_p0 }
 0x4e0   : > { %p1820_p13 = pneg %p1819_p12 }
 0x4e1   : > { %1299 = vrot.lane.b32.xlu1 %v2357_v49, %s1888_s26 }
 0x4e2   : > { %p1827_p3 = pnand %p1826_p2, %p1820_p13 }
 0x4e5   : > { %1297 = vrot.lane.b32.xlu1 %v2361_v50, %s1888_s26 }
 0x4e9   : > { %1440 = vperm.xlu1 %1800, %v1436_v58  }
 0x4ed   : > { %1456 = vperm.xlu1 %1800, %v1452_v59  }
 0x4f7   : > { %v1274_v60 = vpop.permute.xlu1 %1273 }
 0x4fb   : > { %v1254_v61 = vpop.permute.xlu1 %1253 }
 0x4fd   : > { %v1240_v20 = vpop.permute.xlu0 %1239 }
 0x4ff   : > { %v1278_v62 = vpop.permute.xlu1 %1277 }
 0x500   : > { %v1283_v12 = vsel %vm751_vm4, %v1278_v62, %v1274_v60  ;;  %v1281_v13 = vsel %vm751_vm4, %v1274_v60, %v1278_v62 }
 0x501   : > { %v1172_v11 = vpop.permute.xlu0 %1171 }
 0x503   : > { %v1258_v0 = vpop.permute.xlu1 %1257 }
 0x504   : > { %v1263_v18 = vsel %vm730_vm7, %v1258_v0, %v1254_v61  ;;  %v1261_v57 = vsel %vm730_vm7, %v1254_v61, %v1258_v0 }
 0x505   : > { %v1170_v33 = vpop.permute.xlu0 %1169 }
 0x507   : > { %v1276_v2 = vpop.permute.xlu1 %1275 }
 0x509   : > { %v1152_v38 = vpop.permute.xlu0 %1151 }
 0x50b   : > { %v1256_v3 = vpop.permute.xlu1 %1255 }
 0x50d   : > { %v1150_v46 = vpop.permute.xlu0 %1149 }
 0x50f   : > { %v1236_v4 = vpop.permute.xlu1 %1235 }
 0x510   : > { %v1244_v22 = vsel %vm709_vm10, %v1240_v20, %v1236_v4  ;;  %v1242_v23 = vsel %vm709_vm10, %v1236_v4, %v1240_v20 }
 0x511   : > { %v1296_v55 = vpop.permute.xlu0 %1295 }
 0x513   : > { %v1280_v7 = vpop.permute.xlu1 %1279 }
 0x514   : > { %v1282_v8 = vsel %vm751_vm4, %v1276_v2, %v1280_v7  ;;  %v1284_v9 = vsel %vm751_vm4, %v1280_v7, %v1276_v2 }
 0x515   : > { %1721 = vmatprep.subr.msk.mxu0 %vm469_vm3, %v1284_v9  ;;  %v1294_v62 = vpop.permute.xlu0 %1293 }
 0x516   : > { %1360 = vmatpush1.msra.mxu0 %v1282_v8 }
 0x517   : > { %1722 = vmatprep.subr.msk.mxu0 %vm469_vm3, %v1283_v12  ;;  %v1260_v14 = vpop.permute.xlu1 %1259  ;;  %vm2664_vm3 = vcmp.lt.s32.totalorder %v2130_v54, 1 }
 0x518   : > { %v1262_v16 = vsel %vm730_vm7, %v1256_v3, %v1260_v14  ;;  %v1264_v17 = vsel %vm730_vm7, %v1260_v14, %v1256_v3  ;;  %1362 = vmatpush1.msra.mxu0 %v1281_v13  ;;  %vm2665_vm4 = vmmov %vm2664_vm3  ;;  %v1313_v3 = vld [vmem:[%s2623_s8] sm:$0xff] }
 0x519   : > { %1723 = vmatprep.subr.msk.mxu0 %vm2159_vm6, %v1264_v17  ;;  %vm2667_vm7 = vmmov %vm2664_vm3 }
 0x51a   : > { %1724 = vmatpush1.msk.msra.mxu0 %vm2170_vm8, %v1262_v16 }
 0x51b   : > { %1725 = vmatprep.subr.msk.mxu0 %vm2159_vm6, %v1263_v18  ;;  %v1234_v21 = vpop.permute.xlu1 %1233  ;;  %vm2666_vm6 = vmmov %vm2664_vm3 }
 0x51c   : > { %1726 = vmatpush1.msk.msra.mxu0 %vm2170_vm8, %v1261_v57 }
 0x51d   : > { %1727 = vmatprep.subr.msk.mxu0 %vm2182_vm9, %v1244_v22 }
 0x51e   : > { %1728 = vmatpush1.msk.msra.mxu0 %vm2193_vm11, %v1242_v23 }
 0x51f   : > { %v1238_v24 = vpop.permute.xlu1 %1237 }
 0x520   : > { %v1241_v5 = vsel %vm709_vm10, %v1234_v21, %v1238_v24  ;;  %v1243_v25 = vsel %vm709_vm10, %v1238_v24, %v1234_v21  ;;  %vm2668_vm10 = vcmp.lt.s32.totalorder %v2130_v54, 15 }
 0x521   : > { %1729 = vmatprep.subr.msk.mxu0 %vm2182_vm9, %v1243_v25 }
 0x522   : > { %1730 = vmatpush1.msk.msra.mxu0 %vm2193_vm11, %v1241_v5  ;;  %v1446_v7 = vpop.permute.xlu0 %1445 }
 0x523   : > { %1371 = vmatprep.subr.mxu0 %v2357_v49  ;;  %v1212_v26 = vpop.permute.xlu1 %1211 }
 0x524   : > { %1372 = vmatpush1.msra.mxu0 %v2365_v1 }
 0x525   : > { %1373 = vmatprep.subr.mxu0 %v2361_v50 }
 0x526   : > { %1374 = vmatpush1.msra.mxu0 %v2353_v44  ;;  %v1462_v17 = vpop.permute.xlu0 %1461 }
 0x527   : > { %v1210_v27 = vpop.permute.xlu1 %1209 }
 0x52b   : > { %v1214_v28 = vpop.permute.xlu1 %1213 }
 0x52c   : > { %v1217_v39 = vsel %vm2666_vm6, %v1210_v27, %v1214_v28  ;;  %v1219_v40 = vsel %vm2667_vm7, %v1214_v28, %v1210_v27  ;;  %vm2672_vm7 = vcmp.lt.s32.totalorder %v2130_v54, 16  ;;  %v1315_v54 = vld [vmem:[%s2623_s8 + $0x10] sm:$0xff]  ;;  %v1480_v27 = vshrl.u32 %v461_v53, 7 }
 0x52d   : > { %v1889_v28 = vmov 1966171168  }
 0x52f   : > { %v1192_v29 = vpop.permute.xlu1 %1191 }
 0x533   : > { %v1190_v6 = vpop.permute.xlu1 %1189 }
 0x537   : > { %v1194_v30 = vpop.permute.xlu1 %1193 }
 0x53b   : > { %v1174_v32 = vpop.permute.xlu1 %1173 }
 0x53f   : > { %v1154_v34 = vpop.permute.xlu1 %1153 }
 0x540   : > { %v1157_v56 = vsel %vm621_vm1, %v1150_v46, %v1154_v34  ;;  %v1159_v58 = vsel %vm621_vm1, %v1154_v34, %v1150_v46 }
 0x543   : > { %v1216_v35 = vpop.permute.xlu1 %1215 }
 0x544   : > { %v1218_v36 = vsel %vm2664_vm3, %v1212_v26, %v1216_v35  ;;  %v1220_v37 = vsel %vm2665_vm4, %v1216_v35, %v1212_v26  ;;  %vm2669_vm3 = vmmov %vm2668_vm10  ;;  %v1472_v26 = vld [vmem:[%s2626_s11] sm:$0x1] }
 0x545   : > { %1731 = vmatprep.subr.msk.mxu0 %vm2142_vm5, %v1218_v36  ;;  %vm2670_vm4 = vmmov %vm2669_vm3 }
 0x546   : > { %1732 = vmatpush1.msk.msra.mxu0 %vm2170_vm8, %v1220_v37  ;;  %v1197_v45 = vsel %vm2670_vm4, %v1190_v6, %v1194_v30  ;;  %vm2671_vm6 = vmmov %vm2669_vm3 }
 0x547   : > { %1733 = vmatprep.subr.msk.mxu0 %vm2142_vm5, %v1217_v39  ;;  %v1196_v41 = vpop.permute.xlu1 %1195  ;;  %v1199_v47 = vsel %vm2671_vm6, %v1194_v30, %v1190_v6  ;;  %v1481_v6 = vsub.s32 0, %v1480_v27  ;;  %v1477_v30 = vpop.permute.xlu0 %1476 }
 0x548   : > { %v1198_v42 = vsel %vm2668_vm10, %v1192_v29, %v1196_v41  ;;  %v1200_v44 = vsel %vm2669_vm3, %v1196_v41, %v1192_v29  ;;  %1734 = vmatpush1.msk.msra.mxu0 %vm2170_vm8, %v1219_v40  ;;  %vm2673_vm8 = vmmov %vm2672_vm7  ;;  %v1561_v29 = vunpack.c.l.s4 %v1889_v28 }
 0x549   : > { %1735 = vmatprep.subr.msk.mxu0 %vm2182_vm9, %v1198_v42  ;;  %vm2674_vm10 = vmmov %vm2672_vm7 }
 0x54a   : > { %1736 = vmatpush1.msk.msra.mxu0 %vm2244_vm15, %v1200_v44  ;;  %v1177_v1 = vsel %vm2674_vm10, %v1170_v33, %v1174_v32  ;;  %vm2675_vm3 = vmmov %vm2672_vm7 }
 0x54b   : > { %1737 = vmatprep.subr.msk.mxu0 %vm2182_vm9, %v1197_v45  ;;  %v1176_v49 = vpop.permute.xlu1 %1175  ;;  %v1179_v15 = vsel %vm2675_vm3, %v1174_v32, %v1170_v33  ;;  %v1482_v33 = vrot.slane %v1477_v30, %v1481_v6 }
 0x54c   : > { %v1180_v10 = vsel %vm2672_vm7, %v1176_v49, %v1172_v11  ;;  %1738 = vmatpush1.msk.msra.mxu0 %vm2244_vm15, %v1199_v47  ;;  %v1178_v50 = vsel %vm2673_vm8, %v1172_v11, %v1176_v49  ;;  %v1562_v11 = vunpack.c.0.s8 %v1561_v29 }
 0x54d   : > { %1383 = vmatprep.subr.mxu0 %v1178_v50 }
 0x54e   : > { %1739 = vmatpush1.msk.msra.mxu0 %vm466_vm13, %v1180_v10  ;;  %v1565_v37 = vsub.s32 %v1562_v11, %v1480_v27 }
 0x54f   : > { %1385 = vmatprep.subr.mxu0 %v1177_v1  ;;  %v1156_v51 = vpop.permute.xlu1 %1155 }
 0x550   : > { %v1158_v52 = vsel %vm621_vm1, %v1152_v38, %v1156_v51  ;;  %v1160_v31 = vsel %vm621_vm1, %v1156_v51, %v1152_v38  ;;  %1740 = vmatpush1.msk.msra.mxu0 %vm466_vm13, %v1179_v15 }
 0x551   : > { %1741 = vmatprep.subr.msk.mxu0 %vm2142_vm5, %v1158_v52 }
 0x552   : > { %1742 = vmatpush1.msk.msra.mxu0 %vm2290_vm14, %v1160_v31 }
 0x553   : > { %1743 = vmatprep.subr.msk.mxu0 %vm2142_vm5, %v1157_v56  ;;  %v1300_v59 = vpop.permute.xlu1 %1299 }
 0x554   : > { %v1302_v60 = vsel %vm772_vm0, %v1296_v55, %v1300_v59  ;;  %v1304_v61 = vsel %vm772_vm0, %v1300_v59, %v1296_v55  ;;  %1744 = vmatpush1.msk.msra.mxu0 %vm2290_vm14, %v1159_v58 }
 0x555   : > { %1745 = vmatprep.subr.msk.mxu0 %vm2312_vm12, %v1304_v61 }
 0x556   : > { %1746 = vmatpush2.msk.msra.mxu0 %vm2193_vm11, %v1302_v60 }
 0x557   : > { %v1298_v0 = vpop.permute.xlu1 %1297 }
 0x558   : > { %v1301_v63 = vsel %vm772_vm0, %v1294_v62, %v1298_v0  ;;  %v1303_v2 = vsel %vm772_vm0, %v1298_v0, %v1294_v62 }
 0x559   : > { %1747 = vmatprep.subr.msk.mxu0 %vm2312_vm12, %v1303_v2 }
 0x55a   : > { %1748 = vmatpush2.msk.msra.mxu0 %vm2193_vm11, %v1301_v63 }
 0x55b   : > { %1424 = vmatmul.mubr.f32.vlgmr.msra.gmra.mxu0 %v1313_v3 }
 0x55c   : > { %1683 = vmatprep.mubr.msk.f32.mxu0 %vm825_vm2, %v1316_v43 }
 0x55f   : > { %1430 = vmatmul.mubr.f32.gmra.mxu0 %v1315_v54 }
 0x564   : > { %v1441_v8 = vpop.permute.xlu1 %1440 }
 0x568   : > { %v1457_v18 = vpop.permute.xlu1 %1456 }
 0x61b   : > { %v1425_v4 = vpop.f32.mrf.mxu0 }
 0x61c   : > { %v1448_v14 = vmul.f32 %v1441_v8, %v1425_v4 }
 0x61d   : > { %v1427_v48 = vpop.f32.mrf.mxu0 }
 0x61e   : > { %v1449_v12 = vmul.f32 %v1441_v8, %v1427_v48  ;;  %v1464_v22 = vadd.f32 %v1457_v18, %v1448_v14 }
 0x61f   : > { %v1431_v9 = vpop.f32.mrf.mxu0 }
 0x620   : > { %v1450_v13 = vmul.f32 %v1446_v7, %v1431_v9  ;;  %v1465_v57 = vadd.f32 %v1457_v18, %v1449_v12  ;;  %v1468_v25 = vmax.f32 %v1464_v22, 0.0 }
 0x621   : > { %v1433_v16 = vpop.f32.mrf.mxu0 }
 0x622   : > { %v1451_v19 = vmul.f32 %v1446_v7, %v1433_v16  ;;  %v1466_v20 = vadd.f32 %v1462_v17, %v1450_v13  ;;  %v1469_v5 = vmax.f32 %v1465_v57, 0.0 }
 0x624   : > { %v1467_v21 = vadd.f32 %v1462_v17, %v1451_v19  ;;  %v1470_v24 = vmax.f32 %v1466_v20, 0.0 }
 0x626   : > { %v1471_v23 = vmax.f32 %v1467_v21, 0.0 }
 0x628   : > { %1514 = vmatprep.subr.mxu1 %v1471_v23 }
 0x629   : > { %1515 = vmatpush1.msra.mxu1 %v1470_v24 }
 0x62a   : > { %1516 = vmatprep.subr.mxu1 %v1469_v5 }
 0x62b   : > { %1517 = vmatpush1.msra.mxu1 %v1468_v25 }
 0x62c   : > { %1684 = vmatmul.mubr.msk.f32.vlgmr.msra.gmra.mxu1 %vm825_vm2, %v1472_v26  ;;  %vm1577_vm2 = vcmp.lt.s32.totalorder %v461_v53, 256 }
 0x6ec   : > { %v1552_v32 = vpop.f32.mrf.mxu1 }
 0x6ed   : > { %v1553_v35 = vadd.f32 %v1552_v32, %v1482_v33 }
 0x6ee   : > { %v1554_v34 = vpop.f32.mrf.mxu1 }
 0x6ef   : > { %v1555_v36 = vadd.f32 %v1554_v34, %v1482_v33 }
 0x6f1   : > { %v1559_v38 = vcombine.low %v1553_v35, %v1555_v36 }
 0x6f3   : > { %v1566_v39 = vrot.slane %v1559_v38, %v1565_v37 }
 0x6f5   : > { %v1573_v40 = vrot.slane %v1566_v39, %v1565_v37 }
 0x6f7   : > { %1579 = vst.msk [vmem:[%s450_s24] sm:$0x3] %vm1577_vm2, %v1573_v40 }
 0x6f8   : > { %1830 = shalt.err (!%p1827_p3)
}
 0x6f9   : > { %s1831_s20 = scalar_lea.hbm %s1593_s18, 32  ;;  %s1835_s16 = scalar_lea.hbm %s2628_s13, 64 }
 0x6fa   : > { %p1832_p4 = scmp.ne.s32.totalorder %s1593_s18, %s1831_s20  ;;  %p1836_p9 = scmp.lt.s32.totalorder %s1593_s18, %s2628_s13 }
 0x6fb   : > { %p1837_p10 = scmp.lt.s32.totalorder %s1835_s16, %s1831_s20 }
 0x6fc   : > { %p1833_p7 = pnand %p1832_p4, %p2002_p5 }
 0x6fd   : > { %p1838_p11 = por %p1837_p10, %p1836_p9 }
 0x6fe   : > { %p1834_p8 = pneg %p1833_p7 }
 0x700   : > { %p1839_p12 = pnand %p1838_p11, %p1834_p8 }
 0x702   : > { %1842 = shalt.err (!%p1839_p12)
}
 0x703   : > { %1749 = dma.vmem_to_hbm [thread:$0]  (%p2002_p5), %s1596_s17, 32, %s1593_s18, %s1581_s23  }
 0x704 PF: > { %p1755_p13 = scmp.ge.s32.totalorder %s1877_s30, 2  ;;  %s1607_s15 = sand.u32 1, %s1865_s27  }
 0x705   : > { %s1608_s21 = scalar_lea.sflag [#allocation6], %s1607_s15 }
 0x706   : > { %p1752_p0 = pnand %p1755_p13, %p2006_p6 }
 0x708   : > { %p1753_p1 = pneg %p1752_p0 }
 0x70a   : > { %1860 = dma.done.wait (%p1753_p1), %s1608_s21, 32  }
 0x70b   : > { %1862 = vsyncadd (%p1753_p1), %s1608_s21, 4294967264  ;;  %s2677_s30 = sld [smem:[#allocation9_spill]]  ;;  %s2680_s27 = smov %s1869_s28 }
 0x70c   : > { %s2678_s12 = sld [smem:[#allocation8_spill]] }
 0x70d   : > { %s2679_s29 = sld [smem:[#allocation10_spill]] }
 0x711   : > { %p25_p2 = scmp.ge.s32.totalorder %s2677_s30, 4  }
 0x712   : > { %s2681_s28 = smov %s2678_s12 }
 0x713   :  { %27 = sbr.rel (!%p25_p2) target bundleno = 6 (0x6), region = 110 }
 0x718   :  { %1613 = vsyncpa [#allocation6], 1 }
 0x719   :  { %1615 = vsyncpa [#allocation6 + $0x1], 1 }

</bundles_post_ra>
